<compile_context>
chip_gen: v7x
topology: tpu7x:2x2x1
jax: 0.10.0
libtpu: 0.0.40
codegen_flags: <defaults>
</compile_context>

<pallas_src>
import functools

import jax
import jax.numpy as jnp
from jax import lax
from jax.experimental import pallas as pl
from jax.experimental.pallas import tpu as pltpu


def _round_up(x, m):
    return (x + m - 1) // m * m


# ------------------------------ fused kernel ---------------------------------

def _bottleneck_kernel(xp_ref, xres_ref, w1_ref, s1_ref, b1_ref,
                       w2_ref, s2_ref, b2_ref, w3_ref, s3_ref, b3_ref,
                       o_ref, t1_ref, *, H, W, Wp, TR, planes):
    r = pl.program_id(1)               # row-tile index
    h0 = r * TR                        # first padded row of this tile's window

    # ---- conv1 (1x1) + bn1 + relu on this tile's TR+2 halo rows -------------
    # xp_ref holds the whole zero-padded bf16 image (rows h+2, cols Wp); the
    # TR+2-row window is a cheap leading-dim dynamic slice.
    xwin = xp_ref[0, pl.ds(h0, TR + 2)]                     # (TR+2, Wp, Cin) bf16
    c1 = jnp.dot(xwin.reshape((TR + 2) * Wp, -1), w1_ref[...],
                 preferred_element_type=jnp.float32)
    c1 = jnp.maximum(c1 * s1_ref[...] + b1_ref[...], 0.0)
    c1 = c1.reshape(TR + 2, Wp, planes)
    # Zero every position that must be conv2 zero-padding (outside the image):
    # branchless mask instead of border stores / pl.when edge cases.
    rows = lax.broadcasted_iota(jnp.int32, (TR + 2, Wp, planes), 0) + (h0 - 1)
    cols = lax.broadcasted_iota(jnp.int32, (TR + 2, Wp, planes), 1)
    valid = (rows >= 0) & (rows < H) & (cols >= 1) & (cols <= W)
    t1_ref[...] = jnp.where(valid, c1, 0.0).astype(jnp.bfloat16)   # bf16 scratch

    # ---- conv2 (3x3, stride=1, pad=1) + bn2 + relu ---------------------------
    # kh folded into the contraction (K = 3*planes) via three ALIGNED
    # leading-dim slabs; kw alignment via pltpu.roll on the f32 result.
    patch = jnp.concatenate(
        [t1_ref[0:TR], t1_ref[1:TR + 1], t1_ref[2:TR + 2]], axis=-1)
    patch = patch.reshape(TR * Wp, 3 * planes)              # bf16 lhs, reused 3x
    acc = jnp.dot(patch, w2_ref[0], preferred_element_type=jnp.float32)
    for kw in (1, 2):
        tap = jnp.dot(patch, w2_ref[kw], preferred_element_type=jnp.float32)
        acc = acc + pltpu.roll(tap, shift=TR * Wp - kw, axis=0)
    h2 = acc.reshape(TR, Wp, planes)[:, 0:W, :].reshape(TR * W, planes)
    h2 = jnp.maximum(h2 * s2_ref[...] + b2_ref[...], 0.0)

    # ---- conv3 (1x1) + bn3 + identity residual + relu ------------------------
    y = jnp.dot(h2.astype(jnp.bfloat16), w3_ref[...],
                preferred_element_type=jnp.float32)
    y = y * s3_ref[...] + b3_ref[...] + xres_ref[0]         # f32 residual
    o_ref[0] = jnp.maximum(y, 0.0).astype(o_ref.dtype)      # dense (TR*W, Cout)


def _pick_row_tile(h, w, target_rows=2048):
    """Largest divisor tr of h with tr*w <= target and tr*w a multiple of 8."""
    best = h
    for tr in range(1, h + 1):
        if h % tr or tr * w > target_rows or (tr * w) % 8:
            continue
        best = tr
    return best


def _const_spec(shape):
    # Grid-invariant operand: constant index map + single-buffered (saves VMEM).
    return pl.BlockSpec(shape, lambda i, r: (0,) * len(shape),
                        pipeline_mode=pl.Buffered(1))


# ------------------------------ Bottleneck block ------------------------------

def bottleneck_forward(x_nchw, params, *, stride=1, row_tile=None):
    # downsample=None (PyTorch default): identity residual requires stride == 1
    # and inplanes == planes * expansion.
    assert stride == 1, "TODO(synk): stride>1 / downsample path not implemented"
    x = jnp.transpose(x_nchw, (0, 2, 3, 1)).astype(jnp.float32)   # NCHW -> NHWC
    n, h, w, cin = x.shape
    planes = params["w1"].shape[1]
    cout = params["w3"].shape[1]
    assert cin == cout, "identity residual needs inplanes == planes*expansion"

    tr = _pick_row_tile(h, w) if row_tile is None else row_tile
    assert h % tr == 0, (h, tr)
    assert tr == h or (tr * w) % 8 == 0, (tr, w)   # (8,128) rule on out blocks
    n_row_tiles = h // tr
    wp = _round_up(w + 2, 16)                      # sublane-aligned padded width

    # conv1 input: bf16 (wrapper-side cast), zero-padded to (h+2, wp) with the
    # image at rows/cols offset 1 so every tile reads a fixed-size halo window.
    xb_pad = jnp.zeros((n, h + 2, wp, cin), jnp.bfloat16)
    xb_pad = xb_pad.at[:, 1:h + 1, 1:w + 1, :].set(x.astype(jnp.bfloat16))
    # residual path stays f32 and is blocked per row tile (lane-dense).
    x_res = x.reshape(n, h * w, cin)

    w1 = params["w1"].astype(jnp.bfloat16)                       # (Cin, planes)
    # fold kh into the contraction: w2f[kw] = concat_kh w2[kh, kw]  (3p, p)
    w2f = jnp.transpose(params["w2"], (1, 0, 2, 3)) \
             .reshape(3, 3 * planes, planes).astype(jnp.bfloat16)
    w3 = params["w3"].astype(jnp.bfloat16)                       # (planes, Cout)

    kernel = functools.partial(_bottleneck_kernel,
                               H=h, W=w, Wp=wp, TR=tr, planes=planes)

    flops = 2 * n * h * w * (cin * planes + 9 * planes * planes + planes * cout)
    bytes_accessed = int(xb_pad.size * 2 + x_res.size * 4 + n * h * w * cout * 4
                         + (w1.size + w2f.size + w3.size) * 2)

    out = pl.pallas_call(
        kernel,
        out_shape=jax.ShapeDtypeStruct((n, h * w, cout), jnp.float32),
        grid_spec=pltpu.PrefetchScalarGridSpec(
            num_scalar_prefetch=0,
            grid=(n, n_row_tiles),
            in_specs=[
                # padded bf16 image, constant across row tiles (fetched once/batch)
                pl.BlockSpec((1, h + 2, wp, cin), lambda i, r: (i, 0, 0, 0)),
                # f32 residual, per row tile
                pl.BlockSpec((1, tr * w, cout), lambda i, r: (i, r, 0)),
                # grid-invariant weights / folded BN params (single-buffered)
                _const_spec((cin, planes)),
                _const_spec((1, planes)),
                _const_spec((1, planes)),
                _const_spec((3, 3 * planes, planes)),
                _const_spec((1, planes)),
                _const_spec((1, planes)),
                _const_spec((planes, cout)),
                _const_spec((1, cout)),
                _const_spec((1, cout)),
            ],
            out_specs=pl.BlockSpec((1, tr * w, cout), lambda i, r: (i, r, 0)),
            # per-tile conv1+pad scratch, bf16, fully rewritten every grid step
            scratch_shapes=[pltpu.VMEM((tr + 2, wp, planes), jnp.bfloat16)],
        ),
        compiler_params=pltpu.CompilerParams(
            # no cross-step state -> both axes parallel (megacore can split either)
            dimension_semantics=("parallel", "parallel"),
            # safe on all of v5e/v6e/v7x; re-derive per generation if tiles grow
            vmem_limit_bytes=32 * 1024 * 1024,
        ),
        cost_estimate=pl.CostEstimate(flops=flops, transcendentals=0,
                                      bytes_accessed=bytes_accessed),
    )(xb_pad, x_res, w1, params["s1"], params["b1"],
      w2f, params["s2"], params["b2"],
      w3, params["s3"], params["b3"])

    out = out.reshape(n, h, w, cout)
    return jnp.transpose(out, (0, 3, 1, 2))                      # NHWC -> NCHW


# -------------------------- deterministic parameters --------------------------

def init_params(key, inplanes, planes, expansion=4, eps=1e-5):
    ks = jax.random.split(key, 15)

    def bn_fold(kg, kb, km, kv, c):
        gamma = 1.0 + 0.1 * jax.random.normal(kg, (c,), jnp.float32)
        beta = 0.1 * jax.random.normal(kb, (c,), jnp.float32)
        mean = 0.1 * jax.random.normal(km, (c,), jnp.float32)
        var = jax.nn.softplus(jax.random.normal(kv, (c,), jnp.float32)) + 0.5
        scale = gamma * jax.lax.rsqrt(var + eps)
        bias = beta - mean * scale
        return scale.reshape(1, c), bias.reshape(1, c)

    params = {
        # conv1: PyTorch (planes, inplanes, 1, 1) -> (inplanes, planes)
        "w1": 0.1 * jax.random.normal(ks[0], (inplanes, planes), jnp.float32),
        # conv2: PyTorch (planes, planes, 3, 3) -> HWIO (3, 3, planes, planes)
        "w2": 0.1 * jax.random.normal(ks[1], (3, 3, planes, planes), jnp.float32),
        # conv3: PyTorch (planes*4, planes, 1, 1) -> (planes, planes*4)
        "w3": 0.1 * jax.random.normal(ks[2], (planes, planes * expansion),
                                      jnp.float32),
    }
    params["s1"], params["b1"] = bn_fold(ks[3], ks[4], ks[5], ks[6], planes)
    params["s2"], params["b2"] = bn_fold(ks[7], ks[8], ks[9], ks[10], planes)
    params["s3"], params["b3"] = bn_fold(ks[11], ks[12], ks[13], ks[14],
                                         planes * expansion)
    return params


# ------------------------------ pure-JAX reference -----------------------------
# Precision-matched: convs take bf16 operands and accumulate in f32, exactly
# like the kernel; BN/ReLU/residual stay f32.

def reference_forward(x_nchw, params, *, stride=1):
    x = jnp.transpose(x_nchw, (0, 2, 3, 1)).astype(jnp.float32)

    def conv(inp, w_hwio, s, pad):
        return jax.lax.conv_general_dilated(
            inp.astype(jnp.bfloat16), w_hwio.astype(jnp.bfloat16),
            window_strides=(s, s), padding=pad,
            dimension_numbers=("NHWC", "HWIO", "NHWC"),
            preferred_element_type=jnp.float32)

    w1 = params["w1"].reshape(1, 1, *params["w1"].shape)
    w3 = params["w3"].reshape(1, 1, *params["w3"].shape)
    out = conv(x, w1, 1, "VALID")
    out = jnp.maximum(out * params["s1"] + params["b1"], 0.0)
    out = conv(out, params["w2"], stride, [(1, 1), (1, 1)])
    out = jnp.maximum(out * params["s2"] + params["b2"], 0.0)
    out = conv(out, w3, 1, "VALID")
    out = out * params["s3"] + params["b3"]
    out = jnp.maximum(out + x, 0.0)
    return jnp.transpose(out, (0, 3, 1, 2))


if __name__ == "__main__":
    planes, expansion = 4, 4
    inplanes = planes * expansion       # 16 — identity residual (downsample=None)
    n, h, w = 2, 16, 16

    key = jax.random.PRNGKey(0)
    kx, kp = jax.random.split(key)
    x = jax.random.normal(kx, (n, inplanes, h, w), jnp.float32)  # NCHW, like PyTorch
    params = init_params(kp, inplanes, planes, expansion)

    ref = reference_forward(x, params, stride=1)

    # Exercise both the single-row-tile (auto) and multi-row-tile code paths.
    for rt in (None, 4):
        out = bottleneck_forward(x, params, stride=1, row_tile=rt)
        out = jax.block_until_ready(out)
        assert out.shape == (n, inplanes, h, w), out.shape
        max_err = float(jnp.max(jnp.abs(out - ref)))
        assert max_err < 5e-3, f"row_tile={rt} max_err={max_err}"

    print("KERNEL_OK")
</pallas_src>

<mosaic_0001>
module attributes {stable_mosaic.version = 11 : i64} {
  func.func @_bottleneck_kernel(%arg0: i32, %arg1: i32, %arg2: memref<1x18x32x16xbf16, #tpu.memory_space<vmem>>, %arg3: memref<1x256x16xf32, #tpu.memory_space<vmem>>, %arg4: memref<16x4xbf16, #tpu.memory_space<vmem>>, %arg5: memref<1x4xf32, #tpu.memory_space<vmem>>, %arg6: memref<1x4xf32, #tpu.memory_space<vmem>>, %arg7: memref<3x12x4xbf16, #tpu.memory_space<vmem>>, %arg8: memref<1x4xf32, #tpu.memory_space<vmem>>, %arg9: memref<1x4xf32, #tpu.memory_space<vmem>>, %arg10: memref<4x16xbf16, #tpu.memory_space<vmem>>, %arg11: memref<1x16xf32, #tpu.memory_space<vmem>>, %arg12: memref<1x16xf32, #tpu.memory_space<vmem>>, %arg13: memref<1x256x16xf32, #tpu.memory_space<vmem>>, %arg14: memref<18x32x4xbf16, #tpu.memory_space<vmem>>) attributes {dimension_semantics = [#tpu.dimension_semantics<parallel>, #tpu.dimension_semantics<parallel>], iteration_bounds = array<i64: 2, 1>, scalar_prefetch = 0 : i64, scratch_operands = 1 : i64, tpu.core_type = #tpu.core_type<tc>, window_params = [{transform_indices = @transform_0, window_bounds = array<i64: 1, 18, 32, 16>}, {transform_indices = @transform_1, window_bounds = array<i64: 1, 256, 16>}, {pipeline_mode = #tpu.pipeline_mode<synchronous>, transform_indices = @transform_2, window_bounds = array<i64: 16, 4>}, {pipeline_mode = #tpu.pipeline_mode<synchronous>, transform_indices = @transform_3, window_bounds = array<i64: 1, 4>}, {pipeline_mode = #tpu.pipeline_mode<synchronous>, transform_indices = @transform_4, window_bounds = array<i64: 1, 4>}, {pipeline_mode = #tpu.pipeline_mode<synchronous>, transform_indices = @transform_5, window_bounds = array<i64: 3, 12, 4>}, {pipeline_mode = #tpu.pipeline_mode<synchronous>, transform_indices = @transform_6, window_bounds = array<i64: 1, 4>}, {pipeline_mode = #tpu.pipeline_mode<synchronous>, transform_indices = @transform_7, window_bounds = array<i64: 1, 4>}, {pipeline_mode = #tpu.pipeline_mode<synchronous>, transform_indices = @transform_8, window_bounds = array<i64: 4, 16>}, {pipeline_mode = #tpu.pipeline_mode<synchronous>, transform_indices = @transform_9, window_bounds = array<i64: 1, 16>}, {pipeline_mode = #tpu.pipeline_mode<synchronous>, transform_indices = @transform_10, window_bounds = array<i64: 1, 16>}, {transform_indices = @transform_11, window_bounds = array<i64: 1, 256, 16>}]} {
    %c16_i32 = arith.constant 16 : i32
    %0 = arith.muli %arg1, %c16_i32 : i32
    %c0 = arith.constant 0 : index
    %1 = arith.index_cast %0 : i32 to index
    %c0_0 = arith.constant 0 : index
    %c0_1 = arith.constant 0 : index
    %2 = vector.load %arg2[%c0, %1, %c0_0, %c0_1] : memref<1x18x32x16xbf16, #tpu.memory_space<vmem>>, vector<1x18x32x16xbf16>
    %3 = vector.shape_cast %2 : vector<1x18x32x16xbf16> to vector<18x32x16xbf16>
    %4 = vector.shape_cast %3 : vector<18x32x16xbf16> to vector<576x16xbf16>
    %c0_2 = arith.constant 0 : index
    %c0_3 = arith.constant 0 : index
    %5 = vector.load %arg4[%c0_2, %c0_3] : memref<16x4xbf16, #tpu.memory_space<vmem>>, vector<16x4xbf16>
    %cst = arith.constant dense<0.000000e+00> : vector<576x4xf32>
    %6 = tpu.matmul %4, %5, %cst {dimension_numbers = #tpu.dot_dimension_numbers<[1], [0], [0], [1], [0, 0, 1, 1], [], []>} : vector<576x16xbf16>, vector<16x4xbf16>, vector<576x4xf32> -> vector<576x4xf32>
    %c0_4 = arith.constant 0 : index
    %c0_5 = arith.constant 0 : index
    %7 = vector.load %arg5[%c0_4, %c0_5] : memref<1x4xf32, #tpu.memory_space<vmem>>, vector<1x4xf32>
    %8 = vector.broadcast %7 : vector<1x4xf32> to vector<576x4xf32>
    %9 = arith.mulf %6, %8 : vector<576x4xf32>
    %c0_6 = arith.constant 0 : index
    %c0_7 = arith.constant 0 : index
    %10 = vector.load %arg6[%c0_6, %c0_7] : memref<1x4xf32, #tpu.memory_space<vmem>>, vector<1x4xf32>
    %11 = vector.broadcast %10 : vector<1x4xf32> to vector<576x4xf32>
    %12 = arith.addf %9, %11 : vector<576x4xf32>
    %cst_8 = arith.constant 0.000000e+00 : f32
    %13 = vector.broadcast %cst_8 : f32 to vector<576x4xf32>
    %14 = arith.maximumf %12, %13 : vector<576x4xf32>
    %15 = vector.shape_cast %14 : vector<576x4xf32> to vector<18x32x4xf32>
    %16 = tpu.iota {dimensions = array<i32: 0>} : vector<18x32x4xi32>
    %c1_i32 = arith.constant 1 : i32
    %17 = arith.subi %0, %c1_i32 : i32
    %18 = vector.broadcast %17 : i32 to vector<18x32x4xi32>
    %19 = arith.addi %16, %18 : vector<18x32x4xi32>
    %20 = tpu.iota {dimensions = array<i32: 1>} : vector<18x32x4xi32>
    %c0_i32 = arith.constant 0 : i32
    %21 = vector.broadcast %c0_i32 : i32 to vector<18x32x4xi32>
    %22 = arith.cmpi sge, %19, %21 : vector<18x32x4xi32>
    %c16_i32_9 = arith.constant 16 : i32
    %23 = vector.broadcast %c16_i32_9 : i32 to vector<18x32x4xi32>
    %24 = arith.cmpi slt, %19, %23 : vector<18x32x4xi32>
    %25 = arith.andi %22, %24 : vector<18x32x4xi1>
    %c1_i32_10 = arith.constant 1 : i32
    %26 = vector.broadcast %c1_i32_10 : i32 to vector<18x32x4xi32>
    %27 = arith.cmpi sge, %20, %26 : vector<18x32x4xi32>
    %28 = arith.andi %25, %27 : vector<18x32x4xi1>
    %c16_i32_11 = arith.constant 16 : i32
    %29 = vector.broadcast %c16_i32_11 : i32 to vector<18x32x4xi32>
    %30 = arith.cmpi sle, %20, %29 : vector<18x32x4xi32>
    %31 = arith.andi %28, %30 : vector<18x32x4xi1>
    %cst_12 = arith.constant 0.000000e+00 : f32
    %32 = vector.broadcast %cst_12 : f32 to vector<18x32x4xf32>
    %33 = arith.select %31, %15, %32 : vector<18x32x4xi1>, vector<18x32x4xf32>
    %34 = arith.truncf %33 : vector<18x32x4xf32> to vector<18x32x4xbf16>
    %c0_13 = arith.constant 0 : index
    %c0_14 = arith.constant 0 : index
    %c0_15 = arith.constant 0 : index
    %35 = vector.load %arg14[%c0_13, %c0_14, %c0_15] : memref<18x32x4xbf16, #tpu.memory_space<vmem>>, vector<18x32x4xbf16>
    tpu.vector_store %arg14[%c0_13, %c0_14, %c0_15], %34 {strides = array<i32>} : memref<18x32x4xbf16, #tpu.memory_space<vmem>>, vector<18x32x4xbf16>,
    %c0_16 = arith.constant 0 : index
    %c0_17 = arith.constant 0 : index
    %c0_18 = arith.constant 0 : index
    %36 = vector.load %arg14[%c0_16, %c0_17, %c0_18] : memref<18x32x4xbf16, #tpu.memory_space<vmem>>, vector<16x32x4xbf16>
    %c1 = arith.constant 1 : index
    %c0_19 = arith.constant 0 : index
    %c0_20 = arith.constant 0 : index
    %37 = vector.load %arg14[%c1, %c0_19, %c0_20] : memref<18x32x4xbf16, #tpu.memory_space<vmem>>, vector<16x32x4xbf16>
    %c2 = arith.constant 2 : index
    %c0_21 = arith.constant 0 : index
    %c0_22 = arith.constant 0 : index
    %38 = vector.load %arg14[%c2, %c0_21, %c0_22] : memref<18x32x4xbf16, #tpu.memory_space<vmem>>, vector<16x32x4xbf16>
    %39 = tpu.concatenate %36, %37, %38 in 2 : vector<16x32x4xbf16>, vector<16x32x4xbf16>, vector<16x32x4xbf16> -> vector<16x32x12xbf16>
    %40 = vector.shape_cast %39 : vector<16x32x12xbf16> to vector<512x12xbf16>
    %c0_23 = arith.constant 0 : index
    %c0_24 = arith.constant 0 : index
    %c0_25 = arith.constant 0 : index
    %41 = vector.load %arg7[%c0_23, %c0_24, %c0_25] : memref<3x12x4xbf16, #tpu.memory_space<vmem>>, vector<1x12x4xbf16>
    %42 = vector.shape_cast %41 : vector<1x12x4xbf16> to vector<12x4xbf16>
    %cst_26 = arith.constant dense<0.000000e+00> : vector<512x4xf32>
    %43 = tpu.matmul %40, %42, %cst_26 {dimension_numbers = #tpu.dot_dimension_numbers<[1], [0], [0], [1], [0, 0, 1, 1], [], []>} : vector<512x12xbf16>, vector<12x4xbf16>, vector<512x4xf32> -> vector<512x4xf32>
    %c1_27 = arith.constant 1 : index
    %c0_28 = arith.constant 0 : index
    %c0_29 = arith.constant 0 : index
    %44 = vector.load %arg7[%c1_27, %c0_28, %c0_29] : memref<3x12x4xbf16, #tpu.memory_space<vmem>>, vector<1x12x4xbf16>
    %45 = vector.shape_cast %44 : vector<1x12x4xbf16> to vector<12x4xbf16>
    %cst_30 = arith.constant dense<0.000000e+00> : vector<512x4xf32>
    %46 = tpu.matmul %40, %45, %cst_30 {dimension_numbers = #tpu.dot_dimension_numbers<[1], [0], [0], [1], [0, 0, 1, 1], [], []>} : vector<512x12xbf16>, vector<12x4xbf16>, vector<512x4xf32> -> vector<512x4xf32>
    %c511_i32 = arith.constant 511 : i32
    %47 = tpu.dynamic_rotate %46 by %c511_i32 dim 0 : vector<512x4xf32>, i32 -> vector<512x4xf32>
    %48 = arith.addf %43, %47 : vector<512x4xf32>
    %c2_31 = arith.constant 2 : index
    %c0_32 = arith.constant 0 : index
    %c0_33 = arith.constant 0 : index
    %49 = vector.load %arg7[%c2_31, %c0_32, %c0_33] : memref<3x12x4xbf16, #tpu.memory_space<vmem>>, vector<1x12x4xbf16>
    %50 = vector.shape_cast %49 : vector<1x12x4xbf16> to vector<12x4xbf16>
    %cst_34 = arith.constant dense<0.000000e+00> : vector<512x4xf32>
    %51 = tpu.matmul %40, %50, %cst_34 {dimension_numbers = #tpu.dot_dimension_numbers<[1], [0], [0], [1], [0, 0, 1, 1], [], []>} : vector<512x12xbf16>, vector<12x4xbf16>, vector<512x4xf32> -> vector<512x4xf32>
    %c510_i32 = arith.constant 510 : i32
    %52 = tpu.dynamic_rotate %51 by %c510_i32 dim 0 : vector<512x4xf32>, i32 -> vector<512x4xf32>
    %53 = arith.addf %48, %52 : vector<512x4xf32>
    %54 = vector.shape_cast %53 : vector<512x4xf32> to vector<16x32x4xf32>
    %55 = vector.extract_strided_slice %54 {offsets = [0, 0, 0], sizes = [16, 16, 4], strides = [1, 1, 1]} : vector<16x32x4xf32> to vector<16x16x4xf32>
    %56 = vector.shape_cast %55 : vector<16x16x4xf32> to vector<256x4xf32>
    %c0_35 = arith.constant 0 : index
    %c0_36 = arith.constant 0 : index
    %57 = vector.load %arg8[%c0_35, %c0_36] : memref<1x4xf32, #tpu.memory_space<vmem>>, vector<1x4xf32>
    %58 = vector.broadcast %57 : vector<1x4xf32> to vector<256x4xf32>
    %59 = arith.mulf %56, %58 : vector<256x4xf32>
    %c0_37 = arith.constant 0 : index
    %c0_38 = arith.constant 0 : index
    %60 = vector.load %arg9[%c0_37, %c0_38] : memref<1x4xf32, #tpu.memory_space<vmem>>, vector<1x4xf32>
    %61 = vector.broadcast %60 : vector<1x4xf32> to vector<256x4xf32>
    %62 = arith.addf %59, %61 : vector<256x4xf32>
    %cst_39 = arith.constant 0.000000e+00 : f32
    %63 = vector.broadcast %cst_39 : f32 to vector<256x4xf32>
    %64 = arith.maximumf %62, %63 : vector<256x4xf32>
    %65 = arith.truncf %64 : vector<256x4xf32> to vector<256x4xbf16>
    %c0_40 = arith.constant 0 : index
    %c0_41 = arith.constant 0 : index
    %66 = vector.load %arg10[%c0_40, %c0_41] : memref<4x16xbf16, #tpu.memory_space<vmem>>, vector<4x16xbf16>
    %cst_42 = arith.constant dense<0.000000e+00> : vector<256x16xf32>
    %67 = tpu.matmul %65, %66, %cst_42 {dimension_numbers = #tpu.dot_dimension_numbers<[1], [0], [0], [1], [0, 0, 1, 1], [], []>} : vector<256x4xbf16>, vector<4x16xbf16>, vector<256x16xf32> -> vector<256x16xf32>
    %c0_43 = arith.constant 0 : index
    %c0_44 = arith.constant 0 : index
    %68 = vector.load %arg11[%c0_43, %c0_44] : memref<1x16xf32, #tpu.memory_space<vmem>>, vector<1x16xf32>
    %69 = vector.broadcast %68 : vector<1x16xf32> to vector<256x16xf32>
    %70 = arith.mulf %67, %69 : vector<256x16xf32>
    %c0_45 = arith.constant 0 : index
    %c0_46 = arith.constant 0 : index
    %71 = vector.load %arg12[%c0_45, %c0_46] : memref<1x16xf32, #tpu.memory_space<vmem>>, vector<1x16xf32>
    %72 = vector.broadcast %71 : vector<1x16xf32> to vector<256x16xf32>
    %73 = arith.addf %70, %72 : vector<256x16xf32>
    %c0_47 = arith.constant 0 : index
    %c0_48 = arith.constant 0 : index
    %c0_49 = arith.constant 0 : index
    %74 = vector.load %arg3[%c0_47, %c0_48, %c0_49] : memref<1x256x16xf32, #tpu.memory_space<vmem>>, vector<1x256x16xf32>
    %75 = vector.shape_cast %74 : vector<1x256x16xf32> to vector<256x16xf32>
    %76 = arith.addf %73, %75 : vector<256x16xf32>
    %cst_50 = arith.constant 0.000000e+00 : f32
    %77 = vector.broadcast %cst_50 : f32 to vector<256x16xf32>
    %78 = arith.maximumf %76, %77 : vector<256x16xf32>
    %c0_51 = arith.constant 0 : index
    %c0_52 = arith.constant 0 : index
    %c0_53 = arith.constant 0 : index
    %79 = vector.load %arg13[%c0_51, %c0_52, %c0_53] : memref<1x256x16xf32, #tpu.memory_space<vmem>>, vector<1x256x16xf32>
    %80 = vector.shape_cast %79 : vector<1x256x16xf32> to vector<256x16xf32>
    %81 = vector.shape_cast %78 : vector<256x16xf32> to vector<1x256x16xf32>
    tpu.vector_store %arg13[%c0_51, %c0_52, %c0_53], %81 {strides = array<i32>} : memref<1x256x16xf32, #tpu.memory_space<vmem>>, vector<1x256x16xf32>,
    return
  }
  func.func @transform_0(%arg0: i32, %arg1: i32) -> (i32, i32, i32, i32) {
    %c0_i32 = arith.constant 0 : i32
    %c0_i32_0 = arith.constant 0 : i32
    %c0_i32_1 = arith.constant 0 : i32
    %c0_i32_2 = arith.constant 0 : i32
    return %arg0, %c0_i32, %c0_i32_0, %c0_i32_1 : i32, i32, i32, i32
  }
  func.func @transform_1(%arg0: i32, %arg1: i32) -> (i32, i32, i32) {
    %c0_i32 = arith.constant 0 : i32
    %c0_i32_0 = arith.constant 0 : i32
    return %arg0, %arg1, %c0_i32 : i32, i32, i32
  }
  func.func @transform_2(%arg0: i32, %arg1: i32) -> (i32, i32) {
    %c0_i32 = arith.constant 0 : i32
    %c0_i32_0 = arith.constant 0 : i32
    %c0_i32_1 = arith.constant 0 : i32
    return %c0_i32, %c0_i32_0 : i32, i32
  }
  func.func @transform_3(%arg0: i32, %arg1: i32) -> (i32, i32) {
    %c0_i32 = arith.constant 0 : i32
    %c0_i32_0 = arith.constant 0 : i32
    %c0_i32_1 = arith.constant 0 : i32
    return %c0_i32, %c0_i32_0 : i32, i32
  }
  func.func @transform_4(%arg0: i32, %arg1: i32) -> (i32, i32) {
    %c0_i32 = arith.constant 0 : i32
    %c0_i32_0 = arith.constant 0 : i32
    %c0_i32_1 = arith.constant 0 : i32
    return %c0_i32, %c0_i32_0 : i32, i32
  }
  func.func @transform_5(%arg0: i32, %arg1: i32) -> (i32, i32, i32) {
    %c0_i32 = arith.constant 0 : i32
    %c0_i32_0 = arith.constant 0 : i32
    %c0_i32_1 = arith.constant 0 : i32
    %c0_i32_2 = arith.constant 0 : i32
    return %c0_i32, %c0_i32_0, %c0_i32_1 : i32, i32, i32
  }
  func.func @transform_6(%arg0: i32, %arg1: i32) -> (i32, i32) {
    %c0_i32 = arith.constant 0 : i32
    %c0_i32_0 = arith.constant 0 : i32
    %c0_i32_1 = arith.constant 0 : i32
    return %c0_i32, %c0_i32_0 : i32, i32
  }
  func.func @transform_7(%arg0: i32, %arg1: i32) -> (i32, i32) {
    %c0_i32 = arith.constant 0 : i32
    %c0_i32_0 = arith.constant 0 : i32
    %c0_i32_1 = arith.constant 0 : i32
    return %c0_i32, %c0_i32_0 : i32, i32
  }
  func.func @transform_8(%arg0: i32, %arg1: i32) -> (i32, i32) {
    %c0_i32 = arith.constant 0 : i32
    %c0_i32_0 = arith.constant 0 : i32
    %c0_i32_1 = arith.constant 0 : i32
    return %c0_i32, %c0_i32_0 : i32, i32
  }
  func.func @transform_9(%arg0: i32, %arg1: i32) -> (i32, i32) {
    %c0_i32 = arith.constant 0 : i32
    %c0_i32_0 = arith.constant 0 : i32
    %c0_i32_1 = arith.constant 0 : i32
    return %c0_i32, %c0_i32_0 : i32, i32
  }
  func.func @transform_10(%arg0: i32, %arg1: i32) -> (i32, i32) {
    %c0_i32 = arith.constant 0 : i32
    %c0_i32_0 = arith.constant 0 : i32
    %c0_i32_1 = arith.constant 0 : i32
    return %c0_i32, %c0_i32_0 : i32, i32
  }
  func.func @transform_11(%arg0: i32, %arg1: i32) -> (i32, i32, i32) {
    %c0_i32 = arith.constant 0 : i32
    %c0_i32_0 = arith.constant 0 : i32
    return %arg0, %arg1, %c0_i32 : i32, i32, i32
  }
}

</mosaic_0001>

<bundles_post_ra>
// kernel: tpu_custom_call.1
= control target key start
LH: loop header
LB: loop body
LE: loop exit
PB: predicated region body
PF: predicated region fallthrough
CT: control target
= control target key end

     0   :  { %s4774_s17 = smov 0   ;;  %s4776_s18 = smov 0   ;;  %s6153_s0 = inlined_call_operand.vmem [shape: bf16[2,18,32,16], index: 0, kind: input, shape index: {}]   ;;  %s6154_s1 = inlined_call_operand.vmem [shape: f32[2,256,16], index: 1, kind: input, shape index: {}]   ;;  %s6155_s2 = inlined_call_operand.vmem [shape: bf16[16,4], index: 2, kind: input, shape index: {}]   ;;  %s6156_s3 = inlined_call_operand.vmem [shape: f32[1,4], index: 3, kind: input, shape index: {}]   ;;  %s6157_s4 = inlined_call_operand.vmem [shape: f32[1,4], index: 4, kind: input, shape index: {}]   ;;  %s6158_s5 = inlined_call_operand.vmem [shape: bf16[3,12,4], index: 5, kind: input, shape index: {}]   ;;  %s6159_s6 = inlined_call_operand.vmem [shape: f32[1,4], index: 6, kind: input, shape index: {}]   ;;  %s6160_s7 = inlined_call_operand.vmem [shape: f32[1,4], index: 7, kind: input, shape index: {}]   ;;  %s6161_s8 = inlined_call_operand.vmem [shape: bf16[4,16], index: 8, kind: input, shape index: {}]   ;;  %s6162_s9 = inlined_call_operand.vmem [shape: f32[1,16], index: 9, kind: input, shape index: {}]   ;;  %s6163_s10 = inlined_call_operand.vmem [shape: f32[1,16], index: 10, kind: input, shape index: {}]   ;;  %s6164_s11 = inlined_call_operand.vmem [shape: f32[2,256,16], index: 11, kind: output, shape index: {}]  }
   0x1   :  { %s4778_s19 = smov 0  }
   0x2 LB: > { %s33_s20 = sadd.s32 1, %s4704_s18  ;;  %p3943_p0 = scmp.ge.s32.totalorder %s4708_s19, 1  ;;  %s4708_s19 = sphi %s4778_s19, %s21_s19   ;;  %s4704_s18 = sphi %s4776_s18, %s6166_s18   ;;  %s4700_s17 = sphi %s4774_s17, %s6165_s17  }
   0x3   : > { %p35_p1 = scmp.ge.s32.totalorder %s33_s20, 2  ;;  %p368_p2 = scmp.lt.s32.totalorder %s4708_s19, 3 }
   0x5   : > { %s6168_s20 = smov (%p35_p1, %s33_s20), 0  ;;  %p369_p3 = pnand %p3943_p0, %p368_p2 }
   0x6   : > { %v4646_v0 = vld [vmem:[%s6155_s2] sm:$0xff] (!%p369_p3)   ;;  %p421_p4 = scmp.lt.s32.totalorder (!%p369_p3), %s4700_s17, 1  ;;  %vm711_vm0 = vcmask (!%p369_p3), 130048   ;;  %v1390_v36 = vlaneseq (!%p369_p3)  ;;  %v4681_v39 = vld [vmem:[%s6158_s5 + $0x8] sm:$0x3f] (!%p369_p3)   ;;  %vm2272_vm1 = vcmask (!%p369_p3), 1045504  }
   0x7   : > { %372 = sbr.rel (%p369_p3) target bundleno = 1095 (0x447), region = 64  ;;  %4304 = vmatprep.subr.bf16.mxu0 (!%p369_p3), %v4646_v0  ;;  %vm1709_vm2 = vcmask (!%p369_p3), 31744   ;;  %v2274_v42 = vsel (!%p369_p3), %vm2272_vm1, %v4681_v39, 0  ;;  %4613 = vmatprep.subr.msk.bf16.mxu1 (!%p369_p3), %vm2272_vm1, %v4681_v39  ;;  %v4710_v43 = vmov (!%p369_p3), 0.0|0.0   ;;  %v4886_v44 = vld [vmem:[%s6156_s3] ss:$0 sm:$0xff] (!%p369_p3) }
   0x8   : > { %4305 = vmatpush3.bf16.msra.mxu0 (!%p369_p3), %v4646_v0  ;;  %v4874_v41 = vshrl.u32 (!%p369_p3), %v1390_v36, 7  ;;  %1711 = vst.msk [vmem:[#allocation2 + $0x8] sm:$0xff] (!%p369_p3), %vm1709_vm2, %v4710_v43  ;;  %1710 = vst.msk [vmem:[#allocation2] sm:$0xff] (!%p369_p3), %vm1709_vm2, %v4710_v43  ;;  %4611 = vmatpush3.bf16.msra.mxu1 (!%p369_p3), %v2274_v42  ;;  %v4891_v46 = vld [vmem:[%s6157_s4] ss:$0 sm:$0xff] (!%p369_p3)  ;;  %v4711_v60 = vmov (!%p369_p3), 0.0  }
   0x9   : > { %4612 = vmatprep.subr.msk.bf16.mxu0 (!%p369_p3), %vm2272_vm1, %v4681_v39  ;;  %1744 = vst.msk [vmem:[#allocation2 + $0x110] sm:$0xff] (!%p369_p3), %vm1709_vm2, %v4710_v43  ;;  %1745 = vst.msk [vmem:[#allocation2 + $0x118] sm:$0xff] (!%p369_p3), %vm1709_vm2, %v4710_v43  ;;  %s4712_s14 = smov (!%p369_p3), 4   ;;  %s4713_s15 = smov (!%p369_p3), 8   ;;  %vm2132_vm5 = vcmask (!%p369_p3), 64512   ;;  %vm2207_vm6 = vcmask (!%p369_p3), 97280  }
   0xa   : > { %v4894_v47 = vadd.s32 (!%p369_p3), 16, %v4874_v41  ;;  %vm1449_vm4 = vcmp.ge.s32.totalorder (!%p369_p3), %v4874_v41, 1  ;;  %vm3467_vm7 = vcmask (!%p369_p3), 1041408   ;;  %vm2597_vm8 = vcmp.lt.s32.totalorder (!%p369_p3), %v4874_v41, 7 }
   0xb   : > { %vm3227_vm9 = vcmp.lt.s32.totalorder (!%p369_p3), %v4874_v41, 6 }
   0xc   : > { %vm1527_vm3 = vcmp.le.s32.totalorder (!%p369_p3), %v4894_v47, 16  ;;  %v4685_v47 = vld [vmem:[%s6158_s5 + $0x10] sm:$0x3f] (!%p369_p3)  }
   0xe   : > { %s6170_s17 = smov (!%p421_p4, %s4700_s17), 1 }
   0xf   : > { %s4617_s23 = smul.u32 288, %s6170_s17  ;;  %s4149_s30 = sshll.u32 %s6170_s17, 8 }
  0x10   : > { %s5972_s16 = scalar_lea.vmem %s6154_s1, %s4149_s30  ;;  %s5993_s24 = scalar_lea.vmem %s6164_s11, %s4149_s30 }
  0x11   : > { %s4801_s26 = scalar_lea.vmem %s6153_s0, %s4617_s23 }
  0x12   : > { %v4647_v1 = vld [vmem:[%s4801_s26] sm:$0xff]   ;;  %v4648_v2 = vld [vmem:[%s4801_s26 + $0x8] sm:$0xff]   ;;  %v4649_v3 = vld [vmem:[%s4801_s26 + $0x10] sm:$0xff]  }
  0x13   : > { %4306 = vmatprep.mubr.msk.bf16.mxu0 %vm711_vm0, %v4647_v1  ;;  %v4650_v4 = vld [vmem:[%s4801_s26 + $0x18] sm:$0xff]   ;;  %v4651_v5 = vld [vmem:[%s4801_s26 + $0x20] sm:$0xff]   ;;  %v4652_v6 = vld [vmem:[%s4801_s26 + $0x28] sm:$0xff]  }
  0x14   : > { %4307 = vmatmul.mubr.msk.bf16.vlgmr.msra.gmra.mrb[0].mxu0 %vm711_vm0, %v4648_v2  ;;  %v4653_v7 = vld [vmem:[%s4801_s26 + $0x30] sm:$0xff]   ;;  %v4654_v8 = vld [vmem:[%s4801_s26 + $0x38] sm:$0xff]   ;;  %v4655_v9 = vld [vmem:[%s4801_s26 + $0x40] sm:$0xff]  }
  0x15   : > { %4310 = vmatprep.mubr.msk.bf16.mxu0 %vm711_vm0, %v4649_v3  ;;  %v4656_v10 = vld [vmem:[%s4801_s26 + $0x48] sm:$0xff]   ;;  %v4657_v11 = vld [vmem:[%s4801_s26 + $0x50] sm:$0xff]   ;;  %v4658_v12 = vld [vmem:[%s4801_s26 + $0x58] sm:$0xff]   ;;  %4379 = vmatpush3.bf16.msra.mxu0 %v2274_v42 }
  0x16   : > { %v4659_v13 = vld [vmem:[%s4801_s26 + $0x60] sm:$0xff]   ;;  %v4660_v14 = vld [vmem:[%s4801_s26 + $0x68] sm:$0xff]   ;;  %v4661_v15 = vld [vmem:[%s4801_s26 + $0x70] sm:$0xff]   ;;  %4615 = vmatprep.subr.msk.bf16.mxu0 %vm2272_vm1, %v4685_v47 }
  0x17   : > { %v4662_v16 = vld [vmem:[%s4801_s26 + $0x78] sm:$0xff]   ;;  %v4663_v17 = vld [vmem:[%s4801_s26 + $0x80] sm:$0xff]   ;;  %v4664_v18 = vld [vmem:[%s4801_s26 + $0x88] sm:$0xff]  }
  0x18   : > { %v4665_v19 = vld [vmem:[%s4801_s26 + $0x90] sm:$0xff]   ;;  %v4666_v20 = vld [vmem:[%s4801_s26 + $0x98] sm:$0xff]   ;;  %v4667_v21 = vld [vmem:[%s4801_s26 + $0xa0] sm:$0xff]  }
  0x19   : > { %v4668_v22 = vld [vmem:[%s4801_s26 + $0xa8] sm:$0xff]   ;;  %v4669_v23 = vld [vmem:[%s4801_s26 + $0xb0] sm:$0xff]   ;;  %v4670_v24 = vld [vmem:[%s4801_s26 + $0xb8] sm:$0xff]  }
  0x1a   : > { %v4671_v25 = vld [vmem:[%s4801_s26 + $0xc0] sm:$0xff]   ;;  %v4672_v26 = vld [vmem:[%s4801_s26 + $0xc8] sm:$0xff]   ;;  %v4673_v27 = vld [vmem:[%s4801_s26 + $0xd0] sm:$0xff]  }
  0x1b   : > { %v4674_v28 = vld [vmem:[%s4801_s26 + $0xd8] sm:$0xff]   ;;  %v4675_v29 = vld [vmem:[%s4801_s26 + $0xe0] sm:$0xff]   ;;  %v4676_v30 = vld [vmem:[%s4801_s26 + $0xe8] sm:$0xff]  }
  0x1c   : > { %4311 = vmatmul.mubr.msk.bf16.gmra.mrb[4].mxu0 %vm711_vm0, %v4650_v4  ;;  %v4677_v31 = vld [vmem:[%s4801_s26 + $0xf0] sm:$0xff]   ;;  %v4678_v32 = vld [vmem:[%s4801_s26 + $0xf8] sm:$0xff]   ;;  %v4679_v33 = vld [vmem:[%s4801_s26 + $0x100] sm:$0xff]  }
  0x1d   : > { %4314 = vmatprep.mubr.msk.bf16.mxu0 %vm711_vm0, %v4651_v5  ;;  %v4680_v34 = vld [vmem:[%s4801_s26 + $0x108] sm:$0xff]  }
  0x24   : > { %4315 = vmatmul.mubr.msk.bf16.gmra.mrb[8].mxu0 %vm711_vm0, %v4652_v6 }
  0x25   : > { %4318 = vmatprep.mubr.msk.bf16.mxu0 %vm711_vm0, %v4653_v7 }
  0x2c   : > { %4319 = vmatmul.mubr.msk.bf16.gmra.mrb[12].mxu0 %vm711_vm0, %v4654_v8 }
  0x2d   : > { %4322 = vmatprep.mubr.msk.bf16.mxu0 %vm711_vm0, %v4655_v9 }
  0x34   : > { %4323 = vmatmul.mubr.msk.bf16.gmra.mrb[16].mxu0 %vm711_vm0, %v4656_v10  ;;  %v4682_v10 = vld [vmem:[%s4801_s26 + $0x110] sm:$0xff]  }
  0x35   : > { %4326 = vmatprep.mubr.msk.bf16.mxu0 %vm711_vm0, %v4657_v11 }
  0x3c   : > { %4327 = vmatmul.mubr.msk.bf16.gmra.mrb[20].mxu0 %vm711_vm0, %v4658_v12  ;;  %v4683_v12 = vld [vmem:[%s4801_s26 + $0x118] sm:$0xff]  }
  0x3d   : > { %4330 = vmatprep.mubr.msk.bf16.mxu0 %vm711_vm0, %v4659_v13 }
  0x44   : > { %4331 = vmatmul.mubr.msk.bf16.gmra.mrb[24].mxu0 %vm711_vm0, %v4660_v14 }
  0x45   : > { %4334 = vmatprep.mubr.msk.bf16.mxu0 %vm711_vm0, %v4661_v15 }
  0x4c   : > { %4335 = vmatmul.mubr.msk.bf16.gmra.mrb[28].mxu0 %vm711_vm0, %v4662_v16 }
  0x4d   : > { %4338 = vmatprep.mubr.msk.bf16.mxu0 %vm711_vm0, %v4663_v17 }
  0x54   : > { %4339 = vmatmul.mubr.msk.bf16.gmra.mrb[32].mxu0 %vm711_vm0, %v4664_v18 }
  0x55   : > { %4342 = vmatprep.mubr.msk.bf16.mxu0 %vm711_vm0, %v4665_v19 }
  0x5c   : > { %4343 = vmatmul.mubr.msk.bf16.gmra.mrb[36].mxu0 %vm711_vm0, %v4666_v20 }
  0x5d   : > { %4346 = vmatprep.mubr.msk.bf16.mxu0 %vm711_vm0, %v4667_v21 }
  0x64   : > { %4347 = vmatmul.mubr.msk.bf16.gmra.mrb[40].mxu0 %vm711_vm0, %v4668_v22 }
  0x65   : > { %4350 = vmatprep.mubr.msk.bf16.mxu0 %vm711_vm0, %v4669_v23 }
  0x6c   : > { %4351 = vmatmul.mubr.msk.bf16.gmra.mrb[44].mxu0 %vm711_vm0, %v4670_v24 }
  0x6d   : > { %4354 = vmatprep.mubr.msk.bf16.mxu0 %vm711_vm0, %v4671_v25 }
  0x74   : > { %4355 = vmatmul.mubr.msk.bf16.gmra.mrb[48].mxu0 %vm711_vm0, %v4672_v26 }
  0x75   : > { %4358 = vmatprep.mubr.msk.bf16.mxu0 %vm711_vm0, %v4673_v27 }
  0x7c   : > { %4359 = vmatmul.mubr.msk.bf16.gmra.mrb[52].mxu0 %vm711_vm0, %v4674_v28 }
  0x7d   : > { %4362 = vmatprep.mubr.msk.bf16.mxu0 %vm711_vm0, %v4675_v29 }
  0x84   : > { %4363 = vmatmul.mubr.msk.bf16.gmra.mrb[56].mxu0 %vm711_vm0, %v4676_v30 }
  0x85   : > { %4366 = vmatprep.mubr.msk.bf16.mxu0 %vm711_vm0, %v4677_v31 }
  0x8c   : > { %4367 = vmatmul.mubr.msk.bf16.gmra.mrb[60].mxu0 %vm711_vm0, %v4678_v32 }
  0x8d   : > { %4370 = vmatprep.mubr.msk.bf16.mxu0 %vm711_vm0, %v4679_v33 }
  0x94   : > { %4371 = vmatmul.mubr.msk.bf16.gmra.mrb[64].mxu0 %vm711_vm0, %v4680_v34 }
  0x95   : > { %4374 = vmatprep.mubr.msk.bf16.mxu0 %vm711_vm0, %v4682_v10 }
  0x9c   : > { %4375 = vmatmul.mubr.msk.bf16.gmra.mrb[68].mxu0 %vm711_vm0, %v4683_v12 }
  0xe7   : > { %v4308_v35 = vpop.f32.mrb[0].mxu0 }
  0xe8   : > { %v854_v37 = vpop.f32.mrb[1].mxu0 }
  0xe9   : > { %v4309_v38 = vpop.f32.mrb[2].mxu0 }
  0xea   : > { %v857_v40 = vpop.f32.mrb[3].mxu0 }
  0xef   : > { %v4312_v45 = vpop.f32.mrb[4].mxu0 }
  0xf0   : > { %v1154_v48 = vmul.f32 %v4312_v45, %v4886_v44  ;;  %v870_v49 = vpop.f32.mrb[5].mxu0 }
  0xf1   : > { %v1152_v50 = vmul.f32 %v4886_v44, %v870_v49  ;;  %v4313_v51 = vpop.f32.mrb[6].mxu0 }
  0xf2   : > { %v1233_v52 = vadd.f32 %v4891_v46, %v1154_v48  ;;  %v873_v53 = vpop.f32.mrb[7].mxu0 }
  0xf3   : > { %v1231_v54 = vadd.f32 %v4891_v46, %v1152_v50  ;;  %v1153_v55 = vmul.f32 %v4886_v44, %v873_v53 }
  0xf4   : > { %v1305_v56 = vmax.f32 %v1233_v52, 0.0 }
  0xf5   : > { %v1303_v57 = vmax.f32 %v1231_v54, 0.0  ;;  %v1232_v58 = vadd.f32 %v4891_v46, %v1153_v55 }
  0xf6   : > { %v1607_v59 = vsel %vm1527_vm3, %v1305_v56, 0.0 }
  0xf7   : > { %v1676_v61 = vpack.c.bf16 %v4711_v60, %v1607_v59  ;;  %v1605_v62 = vsel %vm1449_vm4, %v1303_v57, 0.0  ;;  %v1304_v63 = vmax.f32 %v1232_v58, 0.0  ;;  %v4316_v0 = vpop.f32.mrb[8].mxu0 }
  0xf8   : > { %v1158_v1 = vmul.f32 %v4316_v0, %v4886_v44  ;;  %v886_v2 = vpop.f32.mrb[9].mxu0 }
  0xf9   : > { %1713 = vst.msk [vmem:[#allocation2 + $0x18] sm:$0xff] %vm1709_vm2, %v1676_v61  ;;  %v1675_v3 = vpack.c.bf16 %v1304_v63, %v1605_v62  ;;  %v1156_v4 = vmul.f32 %v4886_v44, %v886_v2  ;;  %v4317_v5 = vpop.f32.mrb[10].mxu0 }
  0xfa   : > { %v1237_v6 = vadd.f32 %v4891_v46, %v1158_v1  ;;  %v889_v7 = vpop.f32.mrb[11].mxu0 }
  0xfb   : > { %1712 = vst.msk [vmem:[#allocation2 + $0x10] sm:$0xff] %vm1709_vm2, %v1675_v3  ;;  %v1235_v8 = vadd.f32 %v4891_v46, %v1156_v4  ;;  %v1157_v9 = vmul.f32 %v4886_v44, %v889_v7 }
  0xfc   : > { %v1309_v11 = vmax.f32 %v1237_v6, 0.0 }
  0xfd   : > { %v1307_v13 = vmax.f32 %v1235_v8, 0.0  ;;  %v1236_v14 = vadd.f32 %v4891_v46, %v1157_v9 }
  0xfe   : > { %v1611_v15 = vsel %vm1527_vm3, %v1309_v11, 0.0 }
  0xff   : > { %v1678_v16 = vpack.c.bf16 %v4711_v60, %v1611_v15  ;;  %v1609_v17 = vsel %vm1449_vm4, %v1307_v13, 0.0  ;;  %v1308_v18 = vmax.f32 %v1236_v14, 0.0  ;;  %v4320_v19 = vpop.f32.mrb[12].mxu0 }
 0x100   : > { %v1162_v20 = vmul.f32 %v4320_v19, %v4886_v44  ;;  %v902_v21 = vpop.f32.mrb[13].mxu0  ;;  %v4927_v22 = vld [vmem:[#allocation2 + $0x18] sm:$0xff] }
 0x101   : > { %1715 = vst.msk [vmem:[#allocation2 + $0x28] sm:$0xff] %vm1709_vm2, %v1678_v16  ;;  %v1677_v23 = vpack.c.bf16 %v1308_v18, %v1609_v17  ;;  %v1160_v24 = vmul.f32 %v4886_v44, %v902_v21  ;;  %1878 = vrot.lane.b32.xlu1 %v4927_v22, %s4712_s14  ;;  %v4321_v25 = vpop.f32.mrb[14].mxu0 }
 0x102   : > { %v1241_v26 = vadd.f32 %v4891_v46, %v1162_v20  ;;  %v905_v27 = vpop.f32.mrb[15].mxu0  ;;  %v4934_v28 = vld [vmem:[#allocation2 + $0x10] sm:$0xff] }
 0x103   : > { %1714 = vst.msk [vmem:[#allocation2 + $0x20] sm:$0xff] %vm1709_vm2, %v1677_v23  ;;  %v1239_v29 = vadd.f32 %v4891_v46, %v1160_v24  ;;  %v1161_v30 = vmul.f32 %v4886_v44, %v905_v27  ;;  %1876 = vrot.lane.b32.xlu0 %v4934_v28, %s4712_s14 }
 0x104   : > { %v1313_v31 = vmax.f32 %v1241_v26, 0.0 }
 0x105   : > { %v1311_v32 = vmax.f32 %v1239_v29, 0.0  ;;  %v1240_v33 = vadd.f32 %v4891_v46, %v1161_v30 }
 0x106   : > { %v1615_v34 = vsel %vm1527_vm3, %v1313_v31, 0.0 }
 0x107   : > { %v1680_v35 = vpack.c.bf16 %v4711_v60, %v1615_v34  ;;  %v1613_v36 = vsel %vm1449_vm4, %v1311_v32, 0.0  ;;  %v1312_v37 = vmax.f32 %v1240_v33, 0.0  ;;  %v4324_v38 = vpop.f32.mrb[16].mxu0 }
 0x108   : > { %v1166_v39 = vmul.f32 %v4324_v38, %v4886_v44  ;;  %v918_v40 = vpop.f32.mrb[17].mxu0  ;;  %v1813_v42 = vld [vmem:[#allocation2 + $0x28] sm:$0xff] }
 0x109   : > { %1717 = vst.msk [vmem:[#allocation2 + $0x38] sm:$0xff] %vm1709_vm2, %v1680_v35  ;;  %v1679_v43 = vpack.c.bf16 %v1312_v37, %v1613_v36  ;;  %v1164_v45 = vmul.f32 %v4886_v44, %v918_v40  ;;  %1974 = vrot.lane.b32.xlu1 %v1813_v42, %s4713_s15  ;;  %v4325_v48 = vpop.f32.mrb[18].mxu0 }
 0x10a   : > { %v1245_v49 = vadd.f32 %v4891_v46, %v1166_v39  ;;  %v921_v50 = vpop.f32.mrb[19].mxu0  ;;  %v4952_v51 = vld [vmem:[#allocation2 + $0x20] sm:$0xff] }
 0x10b   : > { %1716 = vst.msk [vmem:[#allocation2 + $0x30] sm:$0xff] %vm1709_vm2, %v1679_v43  ;;  %v1243_v52 = vadd.f32 %v4891_v46, %v1164_v45  ;;  %v1165_v53 = vmul.f32 %v4886_v44, %v921_v50  ;;  %1880 = vrot.lane.b32.xlu0 %v4952_v51, %s4712_s14  ;;  %v5017_v50 = vld [vmem:[%s6158_s5] sm:$0x3f]  }
 0x10c   : > { %v1317_v54 = vmax.f32 %v1245_v49, 0.0  ;;  %4614 = vmatprep.subr.msk.bf16.mxu1 %vm2272_vm1, %v5017_v50 }
 0x10d   : > { %v1315_v55 = vmax.f32 %v1243_v52, 0.0  ;;  %v1244_v56 = vadd.f32 %v4891_v46, %v1165_v53  ;;  %1882 = vrot.lane.b32.xlu1 %v1813_v42, %s4712_s14 }
 0x10e   : > { %v1619_v57 = vsel %vm1527_vm3, %v1317_v54, 0.0 }
 0x10f   : > { %v1682_v58 = vpack.c.bf16 %v4711_v60, %v1619_v57  ;;  %v1617_v59 = vsel %vm1449_vm4, %v1315_v55, 0.0  ;;  %v1316_v61 = vmax.f32 %v1244_v56, 0.0  ;;  %v4328_v62 = vpop.f32.mrb[20].mxu0 }
 0x110   : > { %v1170_v63 = vmul.f32 %v4328_v62, %v4886_v44  ;;  %v934_v0 = vpop.f32.mrb[21].mxu0 }
 0x111   : > { %1719 = vst.msk [vmem:[#allocation2 + $0x48] sm:$0xff] %vm1709_vm2, %v1682_v58  ;;  %v1681_v1 = vpack.c.bf16 %v1316_v61, %v1617_v59  ;;  %v1168_v2 = vmul.f32 %v4886_v44, %v934_v0  ;;  %1972 = vrot.lane.b32.xlu1 %v4952_v51, %s4713_s15  ;;  %v4329_v3 = vpop.f32.mrb[22].mxu0 }
 0x112   : > { %v1249_v4 = vadd.f32 %v4891_v46, %v1170_v63  ;;  %v937_v5 = vpop.f32.mrb[23].mxu0  ;;  %v5003_v39 = vld [vmem:[#allocation2 + $0x30] sm:$0xff] }
 0x113   : > { %1718 = vst.msk [vmem:[#allocation2 + $0x40] sm:$0xff] %vm1709_vm2, %v1681_v1  ;;  %v1247_v6 = vadd.f32 %v4891_v46, %v1168_v2  ;;  %v1169_v7 = vmul.f32 %v4886_v44, %v937_v5 }
 0x114   : > { %v1321_v8 = vmax.f32 %v1249_v4, 0.0 }
 0x115   : > { %v1319_v9 = vmax.f32 %v1247_v6, 0.0  ;;  %v1248_v10 = vadd.f32 %v4891_v46, %v1169_v7 }
 0x116   : > { %v1623_v11 = vsel %vm1527_vm3, %v1321_v8, 0.0 }
 0x117   : > { %v1684_v12 = vpack.c.bf16 %v4711_v60, %v1623_v11  ;;  %v1621_v13 = vsel %vm1449_vm4, %v1319_v9, 0.0  ;;  %v1320_v14 = vmax.f32 %v1248_v10, 0.0  ;;  %v4332_v15 = vpop.f32.mrb[24].mxu0 }
 0x118   : > { %v1174_v16 = vmul.f32 %v4332_v15, %v4886_v44  ;;  %v950_v17 = vpop.f32.mrb[25].mxu0  ;;  %v4982_v18 = vld [vmem:[#allocation2 + $0x48] sm:$0xff] }
 0x119   : > { %1721 = vst.msk [vmem:[#allocation2 + $0x58] sm:$0xff] %vm1709_vm2, %v1684_v12  ;;  %v1683_v19 = vpack.c.bf16 %v1320_v14, %v1621_v13  ;;  %v1172_v20 = vmul.f32 %v4886_v44, %v950_v17  ;;  %1890 = vrot.lane.b32.xlu0 %v4982_v18, %s4712_s14  ;;  %v4333_v21 = vpop.f32.mrb[26].mxu0 }
 0x11a   : > { %v1253_v23 = vadd.f32 %v4891_v46, %v1174_v16  ;;  %v953_v24 = vpop.f32.mrb[27].mxu0  ;;  %v4992_v29 = vld [vmem:[#allocation2 + $0x40] sm:$0xff]  ;;  %v5060_v21 = vld [vmem:[#allocation2 + $0x38] sm:$0xff] }
 0x11b   : > { %1720 = vst.msk [vmem:[#allocation2 + $0x50] sm:$0xff] %vm1709_vm2, %v1683_v19  ;;  %v1251_v25 = vadd.f32 %v4891_v46, %v1172_v20  ;;  %v1173_v26 = vmul.f32 %v4886_v44, %v953_v24 }
 0x11c   : > { %v1325_v27 = vmax.f32 %v1253_v23, 0.0 }
 0x11d   : > { %v1323_v30 = vmax.f32 %v1251_v25, 0.0  ;;  %v1252_v31 = vadd.f32 %v4891_v46, %v1173_v26  ;;  %1888 = vrot.lane.b32.xlu0 %v4992_v29, %s4712_s14 }
 0x11e   : > { %v1627_v32 = vsel %vm1527_vm3, %v1325_v27, 0.0 }
 0x11f   : > { %v1686_v33 = vpack.c.bf16 %v4711_v60, %v1627_v32  ;;  %v1625_v34 = vsel %vm1449_vm4, %v1323_v30, 0.0  ;;  %v1324_v35 = vmax.f32 %v1252_v31, 0.0  ;;  %v4336_v36 = vpop.f32.mrb[28].mxu0 }
 0x120   : > { %v1178_v37 = vmul.f32 %v4336_v36, %v4886_v44  ;;  %v966_v38 = vpop.f32.mrb[29].mxu0  ;;  %v5005_v40 = vld [vmem:[#allocation2 + $0x58] sm:$0xff] }
 0x121   : > { %1723 = vst.msk [vmem:[#allocation2 + $0x68] sm:$0xff] %vm1709_vm2, %v1686_v33  ;;  %v1685_v42 = vpack.c.bf16 %v1324_v35, %v1625_v34  ;;  %v1176_v43 = vmul.f32 %v4886_v44, %v966_v38  ;;  %1884 = vrot.lane.b32.xlu0 %v5003_v39, %s4712_s14  ;;  %1986 = vrot.lane.b32.xlu1 %v5005_v40, %s4713_s15  ;;  %v4337_v45 = vpop.f32.mrb[30].mxu0 }
 0x122   : > { %v1257_v48 = vadd.f32 %v4891_v46, %v1178_v37  ;;  %v969_v49 = vpop.f32.mrb[31].mxu0  ;;  %v5022_v55 = vld [vmem:[#allocation2 + $0x50] sm:$0xff] }
 0x123   : > { %1722 = vst.msk [vmem:[#allocation2 + $0x60] sm:$0xff] %vm1709_vm2, %v1685_v42  ;;  %v1255_v52 = vadd.f32 %v4891_v46, %v1176_v43  ;;  %v1177_v53 = vmul.f32 %v4886_v44, %v969_v49 }
 0x124   : > { %v1329_v54 = vmax.f32 %v1257_v48, 0.0 }
 0x125   : > { %v1327_v56 = vmax.f32 %v1255_v52, 0.0  ;;  %v1256_v57 = vadd.f32 %v4891_v46, %v1177_v53  ;;  %1894 = vrot.lane.b32.xlu1 %v5005_v40, %s4712_s14  ;;  %1892 = vrot.lane.b32.xlu0 %v5022_v55, %s4712_s14 }
 0x126   : > { %v1631_v58 = vsel %vm1527_vm3, %v1329_v54, 0.0 }
 0x127   : > { %v1688_v59 = vpack.c.bf16 %v4711_v60, %v1631_v58  ;;  %v1629_v61 = vsel %vm1449_vm4, %v1327_v56, 0.0  ;;  %v1328_v62 = vmax.f32 %v1256_v57, 0.0  ;;  %v4340_v63 = vpop.f32.mrb[32].mxu0 }
 0x128   : > { %v1182_v0 = vmul.f32 %v4340_v63, %v4886_v44  ;;  %v982_v1 = vpop.f32.mrb[33].mxu0  ;;  %v5074_v34 = vld [vmem:[#allocation2 + $0x68] sm:$0xff] }
 0x129   : > { %1725 = vst.msk [vmem:[#allocation2 + $0x78] sm:$0xff] %vm1709_vm2, %v1688_v59  ;;  %v1687_v2 = vpack.c.bf16 %v1328_v62, %v1629_v61  ;;  %v1180_v3 = vmul.f32 %v4886_v44, %v982_v1  ;;  %1984 = vrot.lane.b32.xlu1 %v5022_v55, %s4713_s15  ;;  %v4341_v4 = vpop.f32.mrb[34].mxu0 }
 0x12a   : > { %v1261_v5 = vadd.f32 %v4891_v46, %v1182_v0  ;;  %v985_v6 = vpop.f32.mrb[35].mxu0  ;;  %v5042_v7 = vld [vmem:[#allocation2 + $0x60] sm:$0xff] }
 0x12b   : > { %1724 = vst.msk [vmem:[#allocation2 + $0x70] sm:$0xff] %vm1709_vm2, %v1687_v2  ;;  %v1259_v8 = vadd.f32 %v4891_v46, %v1180_v3  ;;  %v1181_v9 = vmul.f32 %v4886_v44, %v985_v6  ;;  %1988 = vrot.lane.b32.xlu0 %v5042_v7, %s4713_s15 }
 0x12c   : > { %v1333_v10 = vmax.f32 %v1261_v5, 0.0 }
 0x12d   : > { %v1331_v11 = vmax.f32 %v1259_v8, 0.0  ;;  %v1260_v12 = vadd.f32 %v4891_v46, %v1181_v9  ;;  %1976 = vrot.lane.b32.xlu1 %v5003_v39, %s4713_s15 }
 0x12e   : > { %v1635_v13 = vsel %vm1527_vm3, %v1333_v10, 0.0 }
 0x12f   : > { %v1690_v14 = vpack.c.bf16 %v4711_v60, %v1635_v13  ;;  %v1633_v15 = vsel %vm1449_vm4, %v1331_v11, 0.0  ;;  %v1332_v16 = vmax.f32 %v1260_v12, 0.0  ;;  %1896 = vrot.lane.b32.xlu0 %v5042_v7, %s4712_s14  ;;  %v4344_v17 = vpop.f32.mrb[36].mxu0 }
 0x130   : > { %v1186_v19 = vmul.f32 %v4344_v17, %v4886_v44  ;;  %v998_v20 = vpop.f32.mrb[37].mxu0  ;;  %v5099_v63 = vld [vmem:[#allocation2 + $0x78] sm:$0xff] }
 0x131   : > { %1727 = vst.msk [vmem:[#allocation2 + $0x88] sm:$0xff] %vm1709_vm2, %v1690_v14  ;;  %v1689_v23 = vpack.c.bf16 %v1332_v16, %v1633_v15  ;;  %v1184_v24 = vmul.f32 %v4886_v44, %v998_v20  ;;  %1978 = vrot.lane.b32.xlu1 %v5060_v21, %s4713_s15  ;;  %v4345_v25 = vpop.f32.mrb[38].mxu0 }
 0x132   : > { %v1265_v26 = vadd.f32 %v4891_v46, %v1186_v19  ;;  %v1001_v27 = vpop.f32.mrb[39].mxu0  ;;  %v5067_v30 = vld [vmem:[#allocation2 + $0x70] sm:$0xff] }
 0x133   : > { %1726 = vst.msk [vmem:[#allocation2 + $0x80] sm:$0xff] %vm1709_vm2, %v1689_v23  ;;  %v1263_v31 = vadd.f32 %v4891_v46, %v1184_v24  ;;  %v1185_v32 = vmul.f32 %v4886_v44, %v1001_v27  ;;  %1992 = vrot.lane.b32.xlu0 %v5067_v30, %s4713_s15 }
 0x134   : > { %v1337_v33 = vmax.f32 %v1265_v26, 0.0 }
 0x135   : > { %v1335_v35 = vmax.f32 %v1263_v31, 0.0  ;;  %v1264_v36 = vadd.f32 %v4891_v46, %v1185_v32  ;;  %1990 = vrot.lane.b32.xlu1 %v5074_v34, %s4713_s15 }
 0x136   : > { %v1639_v37 = vsel %vm1527_vm3, %v1337_v33, 0.0 }
 0x137   : > { %v1692_v38 = vpack.c.bf16 %v4711_v60, %v1639_v37  ;;  %v1637_v42 = vsel %vm1449_vm4, %v1335_v35, 0.0  ;;  %v1336_v43 = vmax.f32 %v1264_v36, 0.0  ;;  %1900 = vrot.lane.b32.xlu0 %v5067_v30, %s4712_s14  ;;  %v4348_v45 = vpop.f32.mrb[40].mxu0 }
 0x138   : > { %v1190_v48 = vmul.f32 %v4348_v45, %v4886_v44  ;;  %v1014_v49 = vpop.f32.mrb[41].mxu0  ;;  %v5124_v20 = vld [vmem:[#allocation2 + $0x88] sm:$0xff] }
 0x139   : > { %1729 = vst.msk [vmem:[#allocation2 + $0x98] sm:$0xff] %vm1709_vm2, %v1692_v38  ;;  %v1691_v52 = vpack.c.bf16 %v1336_v43, %v1637_v42  ;;  %v1188_v53 = vmul.f32 %v4886_v44, %v1014_v49  ;;  %1898 = vrot.lane.b32.xlu1 %v5074_v34, %s4712_s14  ;;  %v4349_v54 = vpop.f32.mrb[42].mxu0 }
 0x13a   : > { %v1269_v56 = vadd.f32 %v4891_v46, %v1190_v48  ;;  %v1017_v57 = vpop.f32.mrb[43].mxu0  ;;  %v5092_v58 = vld [vmem:[#allocation2 + $0x80] sm:$0xff] }
 0x13b   : > { %1728 = vst.msk [vmem:[#allocation2 + $0x90] sm:$0xff] %vm1709_vm2, %v1691_v52  ;;  %v1267_v59 = vadd.f32 %v4891_v46, %v1188_v53  ;;  %v1189_v61 = vmul.f32 %v4886_v44, %v1017_v57  ;;  %1996 = vrot.lane.b32.xlu0 %v5092_v58, %s4713_s15 }
 0x13c   : > { %v1341_v62 = vmax.f32 %v1269_v56, 0.0 }
 0x13d   : > { %v1339_v0 = vmax.f32 %v1267_v59, 0.0  ;;  %v1268_v1 = vadd.f32 %v4891_v46, %v1189_v61  ;;  %1994 = vrot.lane.b32.xlu1 %v5099_v63, %s4713_s15 }
 0x13e   : > { %v1643_v2 = vsel %vm1527_vm3, %v1341_v62, 0.0 }
 0x13f   : > { %v1694_v3 = vpack.c.bf16 %v4711_v60, %v1643_v2  ;;  %v1641_v4 = vsel %vm1449_vm4, %v1339_v0, 0.0  ;;  %v1340_v5 = vmax.f32 %v1268_v1, 0.0  ;;  %1904 = vrot.lane.b32.xlu0 %v5092_v58, %s4712_s14  ;;  %v4352_v6 = vpop.f32.mrb[44].mxu0 }
 0x140   : > { %v1194_v8 = vmul.f32 %v4352_v6, %v4886_v44  ;;  %v1030_v9 = vpop.f32.mrb[45].mxu0  ;;  %v5149_v53 = vld [vmem:[#allocation2 + $0x98] sm:$0xff] }
 0x141   : > { %1731 = vst.msk [vmem:[#allocation2 + $0xa8] sm:$0xff] %vm1709_vm2, %v1694_v3  ;;  %v1693_v10 = vpack.c.bf16 %v1340_v5, %v1641_v4  ;;  %v1192_v11 = vmul.f32 %v4886_v44, %v1030_v9  ;;  %1902 = vrot.lane.b32.xlu1 %v5099_v63, %s4712_s14  ;;  %v4353_v12 = vpop.f32.mrb[46].mxu0 }
 0x142   : > { %v1273_v13 = vadd.f32 %v4891_v46, %v1194_v8  ;;  %v1033_v14 = vpop.f32.mrb[47].mxu0  ;;  %v5117_v15 = vld [vmem:[#allocation2 + $0x90] sm:$0xff] }
 0x143   : > { %1730 = vst.msk [vmem:[#allocation2 + $0xa0] sm:$0xff] %vm1709_vm2, %v1693_v10  ;;  %v1271_v16 = vadd.f32 %v4891_v46, %v1192_v11  ;;  %v1193_v17 = vmul.f32 %v4886_v44, %v1033_v14  ;;  %2000 = vrot.lane.b32.xlu0 %v5117_v15, %s4713_s15 }
 0x144   : > { %v1345_v19 = vmax.f32 %v1273_v13, 0.0 }
 0x145   : > { %v1343_v23 = vmax.f32 %v1271_v16, 0.0  ;;  %v1272_v24 = vadd.f32 %v4891_v46, %v1193_v17  ;;  %1998 = vrot.lane.b32.xlu1 %v5124_v20, %s4713_s15 }
 0x146   : > { %v1647_v25 = vsel %vm1527_vm3, %v1345_v19, 0.0 }
 0x147   : > { %v1696_v26 = vpack.c.bf16 %v4711_v60, %v1647_v25  ;;  %v1645_v27 = vsel %vm1449_vm4, %v1343_v23, 0.0  ;;  %v1344_v31 = vmax.f32 %v1272_v24, 0.0  ;;  %1908 = vrot.lane.b32.xlu0 %v5117_v15, %s4712_s14  ;;  %v4356_v32 = vpop.f32.mrb[48].mxu0 }
 0x148   : > { %v1198_v33 = vmul.f32 %v4356_v32, %v4886_v44  ;;  %v1046_v35 = vpop.f32.mrb[49].mxu0  ;;  %v5174_v13 = vld [vmem:[#allocation2 + $0xa8] sm:$0xff] }
 0x149   : > { %1733 = vst.msk [vmem:[#allocation2 + $0xb8] sm:$0xff] %vm1709_vm2, %v1696_v26  ;;  %v1695_v36 = vpack.c.bf16 %v1344_v31, %v1645_v27  ;;  %v1196_v37 = vmul.f32 %v4886_v44, %v1046_v35  ;;  %1906 = vrot.lane.b32.xlu1 %v5124_v20, %s4712_s14  ;;  %v4357_v38 = vpop.f32.mrb[50].mxu0 }
 0x14a   : > { %v1277_v42 = vadd.f32 %v4891_v46, %v1198_v33  ;;  %v1049_v43 = vpop.f32.mrb[51].mxu0  ;;  %v5142_v45 = vld [vmem:[#allocation2 + $0xa0] sm:$0xff] }
 0x14b   : > { %1732 = vst.msk [vmem:[#allocation2 + $0xb0] sm:$0xff] %vm1709_vm2, %v1695_v36  ;;  %v1275_v48 = vadd.f32 %v4891_v46, %v1196_v37  ;;  %v1197_v49 = vmul.f32 %v4886_v44, %v1049_v43  ;;  %2004 = vrot.lane.b32.xlu0 %v5142_v45, %s4713_s15 }
 0x14c   : > { %v1349_v52 = vmax.f32 %v1277_v42, 0.0 }
 0x14d   : > { %v1347_v54 = vmax.f32 %v1275_v48, 0.0  ;;  %v1276_v56 = vadd.f32 %v4891_v46, %v1197_v49  ;;  %2002 = vrot.lane.b32.xlu1 %v5149_v53, %s4713_s15 }
 0x14e   : > { %v1651_v57 = vsel %vm1527_vm3, %v1349_v52, 0.0 }
 0x14f   : > { %v1698_v59 = vpack.c.bf16 %v4711_v60, %v1651_v57  ;;  %v1649_v61 = vsel %vm1449_vm4, %v1347_v54, 0.0  ;;  %v1348_v62 = vmax.f32 %v1276_v56, 0.0  ;;  %1912 = vrot.lane.b32.xlu0 %v5142_v45, %s4712_s14  ;;  %v4360_v0 = vpop.f32.mrb[52].mxu0 }
 0x150   : > { %v1202_v1 = vmul.f32 %v4360_v0, %v4886_v44  ;;  %v1062_v2 = vpop.f32.mrb[53].mxu0  ;;  %v5199_v48 = vld [vmem:[#allocation2 + $0xb8] sm:$0xff] }
 0x151   : > { %1735 = vst.msk [vmem:[#allocation2 + $0xc8] sm:$0xff] %vm1709_vm2, %v1698_v59  ;;  %v1697_v3 = vpack.c.bf16 %v1348_v62, %v1649_v61  ;;  %v1200_v4 = vmul.f32 %v4886_v44, %v1062_v2  ;;  %1910 = vrot.lane.b32.xlu1 %v5149_v53, %s4712_s14  ;;  %v4361_v5 = vpop.f32.mrb[54].mxu0 }
 0x152   : > { %v1281_v6 = vadd.f32 %v4891_v46, %v1202_v1  ;;  %v1065_v8 = vpop.f32.mrb[55].mxu0  ;;  %v5167_v9 = vld [vmem:[#allocation2 + $0xb0] sm:$0xff] }
 0x153   : > { %1734 = vst.msk [vmem:[#allocation2 + $0xc0] sm:$0xff] %vm1709_vm2, %v1697_v3  ;;  %v1279_v10 = vadd.f32 %v4891_v46, %v1200_v4  ;;  %v1201_v11 = vmul.f32 %v4886_v44, %v1065_v8  ;;  %2008 = vrot.lane.b32.xlu0 %v5167_v9, %s4713_s15 }
 0x154   : > { %v1353_v12 = vmax.f32 %v1281_v6, 0.0 }
 0x155   : > { %v1351_v14 = vmax.f32 %v1279_v10, 0.0  ;;  %v1280_v16 = vadd.f32 %v4891_v46, %v1201_v11  ;;  %2006 = vrot.lane.b32.xlu1 %v5174_v13, %s4713_s15 }
 0x156   : > { %v1655_v17 = vsel %vm1527_vm3, %v1353_v12, 0.0 }
 0x157   : > { %v1700_v19 = vpack.c.bf16 %v4711_v60, %v1655_v17  ;;  %v1653_v23 = vsel %vm1449_vm4, %v1351_v14, 0.0  ;;  %v1352_v24 = vmax.f32 %v1280_v16, 0.0  ;;  %1916 = vrot.lane.b32.xlu0 %v5167_v9, %s4712_s14  ;;  %v4364_v25 = vpop.f32.mrb[56].mxu0 }
 0x158   : > { %v1206_v26 = vmul.f32 %v4364_v25, %v4886_v44  ;;  %v1078_v27 = vpop.f32.mrb[57].mxu0  ;;  %v5224_v12 = vld [vmem:[#allocation2 + $0xc8] sm:$0xff] }
 0x159   : > { %1737 = vst.msk [vmem:[#allocation2 + $0xd8] sm:$0xff] %vm1709_vm2, %v1700_v19  ;;  %v1699_v31 = vpack.c.bf16 %v1352_v24, %v1653_v23  ;;  %v1204_v32 = vmul.f32 %v4886_v44, %v1078_v27  ;;  %1914 = vrot.lane.b32.xlu1 %v5174_v13, %s4712_s14  ;;  %v4365_v33 = vpop.f32.mrb[58].mxu0 }
 0x15a   : > { %v1285_v35 = vadd.f32 %v4891_v46, %v1206_v26  ;;  %v1081_v36 = vpop.f32.mrb[59].mxu0  ;;  %v5192_v37 = vld [vmem:[#allocation2 + $0xc0] sm:$0xff] }
 0x15b   : > { %1736 = vst.msk [vmem:[#allocation2 + $0xd0] sm:$0xff] %vm1709_vm2, %v1699_v31  ;;  %v1283_v38 = vadd.f32 %v4891_v46, %v1204_v32  ;;  %v1205_v42 = vmul.f32 %v4886_v44, %v1081_v36  ;;  %2012 = vrot.lane.b32.xlu0 %v5192_v37, %s4713_s15 }
 0x15c   : > { %v1357_v43 = vmax.f32 %v1285_v35, 0.0 }
 0x15d   : > { %v1355_v49 = vmax.f32 %v1283_v38, 0.0  ;;  %v1284_v52 = vadd.f32 %v4891_v46, %v1205_v42  ;;  %2010 = vrot.lane.b32.xlu1 %v5199_v48, %s4713_s15 }
 0x15e   : > { %v1659_v54 = vsel %vm1527_vm3, %v1357_v43, 0.0 }
 0x15f   : > { %v1702_v56 = vpack.c.bf16 %v4711_v60, %v1659_v54  ;;  %v1657_v57 = vsel %vm1449_vm4, %v1355_v49, 0.0  ;;  %v1356_v59 = vmax.f32 %v1284_v52, 0.0  ;;  %1920 = vrot.lane.b32.xlu0 %v5192_v37, %s4712_s14  ;;  %v4368_v61 = vpop.f32.mrb[60].mxu0 }
 0x160   : > { %v1210_v62 = vmul.f32 %v4368_v61, %v4886_v44  ;;  %v1094_v0 = vpop.f32.mrb[61].mxu0  ;;  %v5249_v49 = vld [vmem:[#allocation2 + $0xd8] sm:$0xff] }
 0x161   : > { %1739 = vst.msk [vmem:[#allocation2 + $0xe8] sm:$0xff] %vm1709_vm2, %v1702_v56  ;;  %v1701_v1 = vpack.c.bf16 %v1356_v59, %v1657_v57  ;;  %1918 = vrot.lane.b32.xlu1 %v5199_v48, %s4712_s14  ;;  %v1208_v2 = vmul.f32 %v4886_v44, %v1094_v0  ;;  %v4369_v3 = vpop.f32.mrb[62].mxu0 }
 0x162   : > { %v1289_v4 = vadd.f32 %v4891_v46, %v1210_v62  ;;  %v5217_v5 = vld [vmem:[#allocation2 + $0xd0] sm:$0xff]  ;;  %v1097_v6 = vpop.f32.mrb[63].mxu0 }
 0x163   : > { %1738 = vst.msk [vmem:[#allocation2 + $0xe0] sm:$0xff] %vm1709_vm2, %v1701_v1  ;;  %2016 = vrot.lane.b32.xlu0 %v5217_v5, %s4713_s15  ;;  %v1287_v8 = vadd.f32 %v4891_v46, %v1208_v2  ;;  %v1209_v10 = vmul.f32 %v4886_v44, %v1097_v6 }
 0x164   : > { %v1361_v11 = vmax.f32 %v1289_v4, 0.0  ;;  %v1746_v4 = vld [vmem:[#allocation2] sm:$0xff] }
 0x165   : > { %v1359_v14 = vmax.f32 %v1287_v8, 0.0  ;;  %2014 = vrot.lane.b32.xlu1 %v5224_v12, %s4713_s15  ;;  %v1288_v16 = vadd.f32 %v4891_v46, %v1209_v10  ;;  %v1747_v10 = vld [vmem:[#allocation2 + $0x8] sm:$0xff] }
 0x166   : > { %v1663_v17 = vsel %vm1527_vm3, %v1361_v11, 0.0 }
 0x167   : > { %v1704_v19 = vpack.c.bf16 %v4711_v60, %v1663_v17  ;;  %v1661_v23 = vsel %vm1449_vm4, %v1359_v14, 0.0  ;;  %v1360_v24 = vmax.f32 %v1288_v16, 0.0  ;;  %1924 = vrot.lane.b32.xlu0 %v5217_v5, %s4712_s14  ;;  %v4372_v25 = vpop.f32.mrb[64].mxu0 }
 0x168   : > { %v5236_v26 = vld [vmem:[#allocation2 + $0xe8] sm:$0xff]  ;;  %v1214_v27 = vmul.f32 %v4372_v25, %v4886_v44  ;;  %v1110_v31 = vpop.f32.mrb[65].mxu0 }
 0x169   : > { %1741 = vst.msk [vmem:[#allocation2 + $0xf8] sm:$0xff] %vm1709_vm2, %v1704_v19  ;;  %v1703_v32 = vpack.c.bf16 %v1360_v24, %v1661_v23  ;;  %1922 = vrot.lane.b32.xlu1 %v5224_v12, %s4712_s14  ;;  %v1212_v33 = vmul.f32 %v4886_v44, %v1110_v31  ;;  %v4373_v35 = vpop.f32.mrb[66].mxu0  ;;  %v2904_v19 = vsel %vm2272_vm1, %v4685_v47, 0 }
 0x16a   : > { %v1293_v36 = vadd.f32 %v4891_v46, %v1214_v27  ;;  %v1113_v38 = vpop.f32.mrb[67].mxu0  ;;  %v5256_v59 = vld [vmem:[#allocation2 + $0xe0] sm:$0xff]  ;;  %v1843_v27 = vld [vmem:[#allocation2 + $0x118] sm:$0xff] }
 0x16b   : > { %1740 = vst.msk [vmem:[#allocation2 + $0xf0] sm:$0xff] %vm1709_vm2, %v1703_v32  ;;  %1930 = vrot.lane.b32.xlu0 %v5236_v26, %s4712_s14  ;;  %v1291_v42 = vadd.f32 %v4891_v46, %v1212_v33  ;;  %v1213_v43 = vmul.f32 %v4886_v44, %v1113_v38  ;;  %v1842_v32 = vld [vmem:[#allocation2 + $0x110] sm:$0xff] }
 0x16c   : > { %v1365_v52 = vmax.f32 %v1293_v36, 0.0 }
 0x16d   : > { %2018 = vrot.lane.b32.xlu1 %v5249_v49, %s4713_s15  ;;  %v1363_v54 = vmax.f32 %v1291_v42, 0.0  ;;  %v1292_v56 = vadd.f32 %v4891_v46, %v1213_v43 }
 0x16e   : > { %v1667_v57 = vsel %vm1527_vm3, %v1365_v52, 0.0 }
 0x16f   : > { %v1706_v61 = vpack.c.bf16 %v4711_v60, %v1667_v57  ;;  %2020 = vrot.lane.b32.xlu0 %v5256_v59, %s4713_s15  ;;  %v1665_v44 = vsel %vm1449_vm4, %v1363_v54, 0.0  ;;  %v1364_v62 = vmax.f32 %v1292_v56, 0.0  ;;  %v2636_v57 = vsel %vm2272_vm1, %v5017_v50, 0 }
 0x170   : > { %v5272_v60 = vld [vmem:[#allocation2 + $0xf8] sm:$0xff] }
 0x171   : > { %1743 = vst.msk [vmem:[#allocation2 + $0x108] sm:$0xff] %vm1709_vm2, %v1706_v61  ;;  %1926 = vrot.lane.b32.xlu1 %v5249_v49, %s4712_s14  ;;  %v1705_v46 = vpack.c.bf16 %v1364_v62, %v1665_v44 }
 0x172   : > { %v5281_v1 = vld [vmem:[#allocation2 + $0xf0] sm:$0xff] }
 0x173   : > { %1742 = vst.msk [vmem:[#allocation2 + $0x100] sm:$0xff] %vm1709_vm2, %v1705_v46  ;;  %1928 = vrot.lane.b32.xlu0 %v5256_v59, %s4712_s14  ;;  %v1879_v0 = vpop.permute.xlu1 %1878 }
 0x174   : > { %v2041_v16 = vsel %vm1709_vm2, %v1747_v10, %v1879_v0 }
 0x175   : > { %2022 = vrot.lane.b32.xlu1 %v5236_v26, %s4713_s15  ;;  %v1877_v6 = vpop.permute.xlu0 %1876 }
 0x176   : > { %v2038_v11 = vsel %vm1709_vm2, %v1746_v4, %v1877_v6 }
 0x177   : > { %1934 = vrot.lane.b32.xlu0 %v5272_v60, %s4712_s14 }
 0x178   : > { %v1810_v8 = vld [vmem:[#allocation2 + $0x108] sm:$0xff] }
 0x179   : > { %1886 = vrot.lane.b32.xlu1 %v5060_v21, %s4712_s14 }
 0x17a   : > { %v1840_v24 = vld [vmem:[#allocation2 + $0x100] sm:$0xff] }
 0x17b   : > { %v1975_v2 = vpop.permute.xlu1 %1974  ;;  %2024 = vrot.lane.b32.xlu0 %v5281_v1, %s4713_s15 }
 0x17c   : > { %v5299_v23 = vsel %vm2132_vm5, %v2041_v16, %v1975_v2 }
 0x17d   : > { %2026 = vrot.lane.b32.xlu1 %v5272_v60, %s4713_s15  ;;  %v1881_v25 = vpop.permute.xlu0 %1880 }
 0x17f   : > { %v1883_v3 = vpop.permute.xlu1 %1882  ;;  %1932 = vrot.lane.b32.xlu0 %v5281_v1, %s4712_s14 }
 0x180   : > { %v2047_v47 = vsel %vm1709_vm2, %v4927_v22, %v1883_v3 }
 0x181   : > { %1980 = vrot.lane.b32.xlu1 %v4992_v29, %s4713_s15 }
 0x183   : > { %v1973_v14 = vpop.permute.xlu1 %1972  ;;  %1938 = vrot.lane.b32.xlu0 %v1810_v8, %s4712_s14 }
 0x184   : > { %v5295_v17 = vsel %vm2132_vm5, %v2038_v11, %v1973_v14 }
 0x185   : > { %4380 = vmatprep.mubr.msk.bf16.mxu0 %vm2207_vm6, %v5295_v17  ;;  %2030 = vrot.lane.b32.xlu1 %v1810_v8, %s4713_s15 }
 0x186   : > { %4381 = vmatmul.mubr.msk.bf16.vlgmr.msra.gmra.mrb[72].mxu0 %vm2207_vm6, %v5299_v23 }
 0x187   : > { %2028 = vrot.lane.b32.xlu0 %v1840_v24, %s4713_s15  ;;  %4511 = vmatpush3.bf16.msra.mxu0 %v2904_v19 }
 0x189   : > { %1982 = vrot.lane.b32.xlu1 %v4982_v18, %s4713_s15 }
 0x18b   : > { %v1891_v31 = vpop.permute.xlu0 %1890  ;;  %1936 = vrot.lane.b32.xlu0 %v1840_v24, %s4712_s14 }
 0x18c   : > { %v2059_v54 = vsel %vm1709_vm2, %v5060_v21, %v1891_v31  ;;  %v2044_v21 = vsel %vm1709_vm2, %v4934_v28, %v1881_v25 }
 0x18d   : > { %2034 = vrot.lane.b32.xlu1 %v1843_v27, %s4713_s15 }
 0x18f   : > { %v1889_v33 = vpop.permute.xlu0 %1888  ;;  %2032 = vrot.lane.b32.xlu0 %v1842_v32, %s4713_s15 }
 0x190   : > { %v2056_v43 = vsel %vm1709_vm2, %v5003_v39, %v1889_v33 }
 0x193   : > { %v5312_v35 = vpop.permute.xlu0 %1884  ;;  %v1987_v36 = vpop.permute.xlu1 %1986 }
 0x194   : > { %v5324_v61 = vsel %vm2132_vm5, %v2059_v54, %v1987_v36 }
 0x197   : > { %v1895_v38 = vpop.permute.xlu1 %1894  ;;  %v1893_v42 = vpop.permute.xlu0 %1892 }
 0x198   : > { %v2062_v44 = vsel %vm1709_vm2, %v4992_v29, %v1893_v42  ;;  %v2065_v4 = vsel %vm1709_vm2, %v4982_v18, %v1895_v38 }
 0x19b   : > { %v1985_v52 = vpop.permute.xlu1 %1984 }
 0x19c   : > { %v5319_v56 = vsel %vm2132_vm5, %v2056_v43, %v1985_v52 }
 0x19d   : > { %4392 = vmatprep.mubr.msk.bf16.mxu1 %vm2207_vm6, %v5319_v56  ;;  %v1989_v39 = vpop.permute.xlu0 %1988 }
 0x19e   : > { %v5331_v62 = vsel %vm2132_vm5, %v2062_v44, %v1989_v39  ;;  %4393 = vmatmul.mubr.msk.bf16.vlgmr.msra.gmra.mrb[0].mxu1 %vm2207_vm6, %v5324_v61 }
 0x19f   : > { %v1977_v50 = vpop.permute.xlu1 %1976  ;;  %4396 = vmatprep.mubr.msk.bf16.mxu1 %vm2207_vm6, %v5331_v62  ;;  %4445 = vmatpush3.bf16.msra.mxu1 %v2636_v57 }
 0x1a0   : > { %v5340_v29 = vsel %vm2132_vm5, %v2044_v21, %v1977_v50 }
 0x1a1   : > { %4384 = vmatprep.mubr.msk.bf16.mxu0 %vm2207_vm6, %v5340_v29  ;;  %v1897_v46 = vpop.permute.xlu0 %1896 }
 0x1a2   : > { %v2068_v8 = vsel %vm1709_vm2, %v5022_v55, %v1897_v46 }
 0x1a3   : > { %v1979_v0 = vpop.permute.xlu1 %1978 }
 0x1a4   : > { %v5347_v2 = vsel %vm2132_vm5, %v2047_v47, %v1979_v0 }
 0x1a5   : > { %4385 = vmatmul.mubr.msk.bf16.gmra.mrb[76].mxu0 %vm2207_vm6, %v5347_v2  ;;  %v1993_v28 = vpop.permute.xlu0 %1992 }
 0x1a6   : > { %v5359_v22 = vsel %vm2132_vm5, %v2068_v8, %v1993_v28 }
 0x1a7   : > { %v1991_v6 = vpop.permute.xlu1 %1990 }
 0x1a8   : > { %v5356_v10 = vsel %vm2132_vm5, %v2065_v4, %v1991_v6 }
 0x1a9   : > { %4397 = vmatmul.mubr.msk.bf16.gmra.mrb[4].mxu1 %vm2207_vm6, %v5356_v10  ;;  %v1901_v3 = vpop.permute.xlu0 %1900 }
 0x1aa   : > { %4400 = vmatprep.mubr.msk.bf16.mxu1 %vm2207_vm6, %v5359_v22  ;;  %v2074_v55 = vsel %vm1709_vm2, %v5042_v7, %v1901_v3 }
 0x1ab   : > { %v1899_v11 = vpop.permute.xlu1 %1898 }
 0x1ac   : > { %v2071_v18 = vsel %vm1709_vm2, %v5005_v40, %v1899_v11 }
 0x1ad   : > { %v1997_v14 = vpop.permute.xlu0 %1996 }
 0x1ae   : > { %v5373_v24 = vsel %vm2132_vm5, %v2074_v55, %v1997_v14  ;;  %v4376_v14 = vpop.f32.mrb[68].mxu0 }
 0x1af   : > { %v1995_v16 = vpop.permute.xlu1 %1994 }
 0x1b0   : > { %v5370_v19 = vsel %vm2132_vm5, %v2071_v18, %v1995_v16  ;;  %v1126_v18 = vpop.f32.mrb[69].mxu0 }
 0x1b1   : > { %4401 = vmatmul.mubr.msk.bf16.gmra.mrb[8].mxu1 %vm2207_vm6, %v5370_v19  ;;  %v1905_v25 = vpop.permute.xlu0 %1904  ;;  %v4377_v16 = vpop.f32.mrb[70].mxu0 }
 0x1b2   : > { %4404 = vmatprep.mubr.msk.bf16.mxu1 %vm2207_vm6, %v5373_v24  ;;  %v2080_v7 = vsel %vm1709_vm2, %v5067_v30, %v1905_v25  ;;  %v1129_v55 = vpop.f32.mrb[71].mxu0 }
 0x1b3   : > { %v1903_v27 = vpop.permute.xlu1 %1902  ;;  %v1751_v55 = vld [vmem:[#allocation2 + $0x28] sm:$0xff] }
 0x1b4   : > { %v2077_v40 = vsel %vm1709_vm2, %v5074_v34, %v1903_v27 }
 0x1b5   : > { %v2001_v31 = vpop.permute.xlu0 %2000 }
 0x1b6   : > { %v5387_v36 = vsel %vm2132_vm5, %v2080_v7, %v2001_v31 }
 0x1b7   : > { %v1999_v32 = vpop.permute.xlu1 %1998 }
 0x1b8   : > { %v5384_v33 = vsel %vm2132_vm5, %v2077_v40, %v1999_v32 }
 0x1b9   : > { %4405 = vmatmul.mubr.msk.bf16.gmra.mrb[12].mxu1 %vm2207_vm6, %v5384_v33  ;;  %v1909_v38 = vpop.permute.xlu0 %1908 }
 0x1ba   : > { %4408 = vmatprep.mubr.msk.bf16.mxu1 %vm2207_vm6, %v5387_v36  ;;  %v2086_v30 = vsel %vm1709_vm2, %v5092_v58, %v1909_v38 }
 0x1bb   : > { %v1907_v42 = vpop.permute.xlu1 %1906 }
 0x1bc   : > { %v2083_v34 = vsel %vm1709_vm2, %v5099_v63, %v1907_v42 }
 0x1bd   : > { %v2005_v43 = vpop.permute.xlu0 %2004 }
 0x1be   : > { %v5401_v57 = vsel %vm2132_vm5, %v2086_v30, %v2005_v43 }
 0x1bf   : > { %v2003_v52 = vpop.permute.xlu1 %2002 }
 0x1c0   : > { %v5398_v54 = vsel %vm2132_vm5, %v2083_v34, %v2003_v52 }
 0x1c1   : > { %4409 = vmatmul.mubr.msk.bf16.gmra.mrb[16].mxu1 %vm2207_vm6, %v5398_v54  ;;  %v1913_v44 = vpop.permute.xlu0 %1912 }
 0x1c2   : > { %4412 = vmatprep.mubr.msk.bf16.mxu1 %vm2207_vm6, %v5401_v57  ;;  %v2092_v58 = vsel %vm1709_vm2, %v5117_v15, %v1913_v44 }
 0x1c3   : > { %v1911_v39 = vpop.permute.xlu1 %1910 }
 0x1c4   : > { %v2089_v63 = vsel %vm1709_vm2, %v5124_v20, %v1911_v39 }
 0x1c5   : > { %v2009_v21 = vpop.permute.xlu0 %2008 }
 0x1c6   : > { %v5415_v47 = vsel %vm2132_vm5, %v2092_v58, %v2009_v21 }
 0x1c7   : > { %v2007_v50 = vpop.permute.xlu1 %2006 }
 0x1c8   : > { %v5412_v46 = vsel %vm2132_vm5, %v2089_v63, %v2007_v50 }
 0x1c9   : > { %4413 = vmatmul.mubr.msk.bf16.gmra.mrb[20].mxu1 %vm2207_vm6, %v5412_v46  ;;  %v1917_v0 = vpop.permute.xlu0 %1916 }
 0x1ca   : > { %4416 = vmatprep.mubr.msk.bf16.mxu1 %vm2207_vm6, %v5415_v47  ;;  %v2098_v15 = vsel %vm1709_vm2, %v5142_v45, %v1917_v0 }
 0x1cb   : > { %v1915_v28 = vpop.permute.xlu1 %1914 }
 0x1cc   : > { %v2095_v20 = vsel %vm1709_vm2, %v5149_v53, %v1915_v28 }
 0x1cd   : > { %v2013_v4 = vpop.permute.xlu0 %2012 }
 0x1ce   : > { %v5429_v3 = vsel %vm2132_vm5, %v2098_v15, %v2013_v4 }
 0x1cf   : > { %v2011_v6 = vpop.permute.xlu1 %2010 }
 0x1d0   : > { %v5426_v8 = vsel %vm2132_vm5, %v2095_v20, %v2011_v6 }
 0x1d1   : > { %4417 = vmatmul.mubr.msk.bf16.gmra.mrb[24].mxu1 %vm2207_vm6, %v5426_v8  ;;  %v1921_v11 = vpop.permute.xlu0 %1920 }
 0x1d2   : > { %4420 = vmatprep.mubr.msk.bf16.mxu1 %vm2207_vm6, %v5429_v3  ;;  %v2104_v31 = vsel %vm1709_vm2, %v5167_v9, %v1921_v11 }
 0x1d3   : > { %v1919_v53 = vpop.permute.xlu1 %1918 }
 0x1d4   : > { %v2101_v45 = vsel %vm1709_vm2, %v5174_v13, %v1919_v53 }
 0x1d5   : > { %v2017_v25 = vpop.permute.xlu0 %2016 }
 0x1d6   : > { %v5443_v32 = vsel %vm2132_vm5, %v2104_v31, %v2017_v25 }
 0x1d7   : > { %v2015_v27 = vpop.permute.xlu1 %2014 }
 0x1d8   : > { %v5440_v40 = vsel %vm2132_vm5, %v2101_v45, %v2015_v27 }
 0x1d9   : > { %4421 = vmatmul.mubr.msk.bf16.gmra.mrb[28].mxu1 %vm2207_vm6, %v5440_v40  ;;  %v1925_v7 = vpop.permute.xlu0 %1924 }
 0x1da   : > { %4424 = vmatprep.mubr.msk.bf16.mxu1 %vm2207_vm6, %v5443_v32  ;;  %v2110_v34 = vsel %vm1709_vm2, %v5192_v37, %v1925_v7 }
 0x1db   : > { %v1923_v38 = vpop.permute.xlu1 %1922 }
 0x1dc   : > { %v2107_v13 = vsel %vm1709_vm2, %v5199_v48, %v1923_v38 }
 0x1dd   : > { %v1931_v42 = vpop.permute.xlu0 %1930 }
 0x1de   : > { %v2119_v4 = vsel %vm1709_vm2, %v5249_v49, %v1931_v42 }
 0x1df   : > { %v2019_v43 = vpop.permute.xlu1 %2018 }
 0x1e0   : > { %v5452_v9 = vsel %vm2132_vm5, %v2107_v13, %v2019_v43 }
 0x1e1   : > { %4425 = vmatmul.mubr.msk.bf16.gmra.mrb[32].mxu1 %vm2207_vm6, %v5452_v9  ;;  %v2021_v52 = vpop.permute.xlu0 %2020 }
 0x1e2   : > { %v5459_v30 = vsel %vm2132_vm5, %v2110_v34, %v2021_v52 }
 0x1e3   : > { %v1927_v44 = vpop.permute.xlu1 %1926  ;;  %4428 = vmatprep.mubr.msk.bf16.mxu1 %vm2207_vm6, %v5459_v30 }
 0x1e4   : > { %v2113_v48 = vsel %vm1709_vm2, %v5224_v12, %v1927_v44 }
 0x1e5   : > { %v1929_v39 = vpop.permute.xlu0 %1928 }
 0x1e6   : > { %v2116_v58 = vsel %vm1709_vm2, %v5217_v5, %v1929_v39  ;;  %v2050_v5 = vsel %vm1709_vm2, %v4952_v51, %v5312_v35 }
 0x1e7   : > { %v2023_v21 = vpop.permute.xlu1 %2022 }
 0x1e8   : > { %v5466_v63 = vsel %vm2132_vm5, %v2113_v48, %v2023_v21 }
 0x1e9   : > { %4429 = vmatmul.mubr.msk.bf16.gmra.mrb[36].mxu1 %vm2207_vm6, %v5466_v63  ;;  %v1935_v37 = vpop.permute.xlu0 %1934 }
 0x1ea   : > { %v2125_v16 = vsel %vm1709_vm2, %v5236_v26, %v1935_v37 }
 0x1eb   : > { %v1887_v50 = vpop.permute.xlu1 %1886 }
 0x1ec   : > { %v2053_v51 = vsel %vm1709_vm2, %v1751_v55, %v1887_v50 }
 0x1ed   : > { %v2025_v0 = vpop.permute.xlu0 %2024 }
 0x1ee   : > { %v5473_v28 = vsel %vm2132_vm5, %v2116_v58, %v2025_v0 }
 0x1ef   : > { %v2027_v12 = vpop.permute.xlu1 %2026  ;;  %4432 = vmatprep.mubr.msk.bf16.mxu1 %vm2207_vm6, %v5473_v28 }
 0x1f0   : > { %v5480_v20 = vsel %vm2132_vm5, %v2119_v4, %v2027_v12 }
 0x1f1   : > { %4433 = vmatmul.mubr.msk.bf16.gmra.mrb[40].mxu1 %vm2207_vm6, %v5480_v20  ;;  %v1933_v6 = vpop.permute.xlu0 %1932 }
 0x1f2   : > { %v2122_v18 = vsel %vm1709_vm2, %v5256_v59, %v1933_v6 }
 0x1f3   : > { %v1981_v15 = vpop.permute.xlu1 %1980 }
 0x1f4   : > { %v2142_v11 = vsel %vm2132_vm5, %v2050_v5, %v1981_v15 }
 0x1f5   : > { %4388 = vmatprep.mubr.msk.bf16.mxu0 %vm2207_vm6, %v2142_v11  ;;  %v1939_v49 = vpop.permute.xlu0 %1938 }
 0x1f6   : > { %v2131_v38 = vsel %vm1709_vm2, %v5272_v60, %v1939_v49  ;;  %v3418_v60 = vld [vmem:[%s6161_s8] sm:$0x3] }
 0x1f7   : > { %v2031_v14 = vpop.permute.xlu1 %2030  ;;  %4616 = vmatprep.subr.msk.bf16.mxu1 %vm3467_vm7, %v3418_v60 }
 0x1f8   : > { %v5498_v35 = vsel %vm2132_vm5, %v2125_v16, %v2031_v14 }
 0x1f9   : > { %v2029_v53 = vpop.permute.xlu0 %2028 }
 0x1fa   : > { %v5494_v25 = vsel %vm2132_vm5, %v2122_v18, %v2029_v53 }
 0x1fb   : > { %v1983_v45 = vpop.permute.xlu1 %1982  ;;  %4436 = vmatprep.mubr.msk.bf16.mxu1 %vm2207_vm6, %v5494_v25 }
 0x1fc   : > { %v2144_v27 = vsel %vm2132_vm5, %v2053_v51, %v1983_v45  ;;  %4437 = vmatmul.mubr.msk.bf16.gmra.mrb[44].mxu1 %vm2207_vm6, %v5498_v35 }
 0x1fd   : > { %4389 = vmatmul.mubr.msk.bf16.gmra.mrb[80].mxu0 %vm2207_vm6, %v2144_v27  ;;  %v1937_v26 = vpop.permute.xlu0 %1936 }
 0x1fe   : > { %4512 = vmatprep.mubr.msk.bf16.mxu0 %vm2207_vm6, %v5295_v17  ;;  %v2128_v31 = vsel %vm1709_vm2, %v5281_v1, %v1937_v26  ;;  %v3469_v1 = vsel %vm3467_vm7, %v3418_v60, 0 }
 0x1ff   : > { %v2035_v59 = vpop.permute.xlu1 %2034 }
 0x200   : > { %v5516_v13 = vsel %vm2132_vm5, %v2131_v38, %v2035_v59 }
 0x201   : > { %v2033_v7 = vpop.permute.xlu0 %2032 }
 0x202   : > { %v5513_v42 = vsel %vm2132_vm5, %v2128_v31, %v2033_v7 }
 0x203   : > { %4440 = vmatprep.mubr.msk.bf16.mxu1 %vm2207_vm6, %v5513_v42 }
 0x204   : > { %4441 = vmatmul.mubr.msk.bf16.gmra.mrb[48].mxu1 %vm2207_vm6, %v5516_v13 }
 0x205   : > { %4446 = vmatprep.mubr.msk.bf16.mxu1 %vm2207_vm6, %v5295_v17  ;;  %4513 = vmatmul.mubr.msk.bf16.vlgmr.msra.gmra.mrb[84].mxu0 %vm2207_vm6, %v5299_v23 }
 0x206   : > { %4516 = vmatprep.mubr.msk.bf16.mxu0 %vm2207_vm6, %v5340_v29 }
 0x20c   : > { %4447 = vmatmul.mubr.msk.bf16.vlgmr.msra.gmra.mrb[52].mxu1 %vm2207_vm6, %v5299_v23 }
 0x20d   : > { %4450 = vmatprep.mubr.msk.bf16.mxu1 %vm2207_vm6, %v5340_v29  ;;  %4517 = vmatmul.mubr.msk.bf16.gmra.mrb[88].mxu0 %vm2207_vm6, %v5347_v2 }
 0x20e   : > { %4520 = vmatprep.mubr.msk.bf16.mxu0 %vm2207_vm6, %v2142_v11  ;;  %4577 = vmatpush3.bf16.msra.mxu1 %v3469_v1 }
 0x214   : > { %4451 = vmatmul.mubr.msk.bf16.gmra.mrb[56].mxu1 %vm2207_vm6, %v5347_v2 }
 0x215   : > { %4454 = vmatprep.mubr.msk.bf16.mxu1 %vm2207_vm6, %v2142_v11  ;;  %4521 = vmatmul.mubr.msk.bf16.gmra.mrb[92].mxu0 %vm2207_vm6, %v2144_v27 }
 0x216   : > { %4524 = vmatprep.mubr.msk.bf16.mxu0 %vm2207_vm6, %v5319_v56 }
 0x21c   : > { %4455 = vmatmul.mubr.msk.bf16.gmra.mrb[60].mxu1 %vm2207_vm6, %v2144_v27 }
 0x21d   : > { %4458 = vmatprep.mubr.msk.bf16.mxu1 %vm2207_vm6, %v5319_v56  ;;  %4525 = vmatmul.mubr.msk.bf16.gmra.mrb[96].mxu0 %vm2207_vm6, %v5324_v61 }
 0x21e   : > { %4528 = vmatprep.mubr.msk.bf16.mxu0 %vm2207_vm6, %v5331_v62 }
 0x224   : > { %4459 = vmatmul.mubr.msk.bf16.gmra.mrb[64].mxu1 %vm2207_vm6, %v5324_v61 }
 0x225   : > { %4462 = vmatprep.mubr.msk.bf16.mxu1 %vm2207_vm6, %v5331_v62  ;;  %4529 = vmatmul.mubr.msk.bf16.gmra.mrb[100].mxu0 %vm2207_vm6, %v5356_v10 }
 0x226   : > { %4532 = vmatprep.mubr.msk.bf16.mxu0 %vm2207_vm6, %v5359_v22 }
 0x22c   : > { %4463 = vmatmul.mubr.msk.bf16.gmra.mrb[68].mxu1 %vm2207_vm6, %v5356_v10 }
 0x22d   : > { %4466 = vmatprep.mubr.msk.bf16.mxu1 %vm2207_vm6, %v5359_v22  ;;  %4533 = vmatmul.mubr.msk.bf16.gmra.mrb[104].mxu0 %vm2207_vm6, %v5370_v19 }
 0x22e   : > { %4536 = vmatprep.mubr.msk.bf16.mxu0 %vm2207_vm6, %v5373_v24 }
 0x234   : > { %4467 = vmatmul.mubr.msk.bf16.gmra.mrb[72].mxu1 %vm2207_vm6, %v5370_v19 }
 0x235   : > { %4470 = vmatprep.mubr.msk.bf16.mxu1 %vm2207_vm6, %v5373_v24  ;;  %4537 = vmatmul.mubr.msk.bf16.gmra.mrb[108].mxu0 %vm2207_vm6, %v5384_v33 }
 0x236   : > { %4540 = vmatprep.mubr.msk.bf16.mxu0 %vm2207_vm6, %v5387_v36 }
 0x23c   : > { %4471 = vmatmul.mubr.msk.bf16.gmra.mrb[76].mxu1 %vm2207_vm6, %v5384_v33 }
 0x23d   : > { %4474 = vmatprep.mubr.msk.bf16.mxu1 %vm2207_vm6, %v5387_v36  ;;  %4541 = vmatmul.mubr.msk.bf16.gmra.mrb[112].mxu0 %vm2207_vm6, %v5398_v54 }
 0x23e   : > { %4544 = vmatprep.mubr.msk.bf16.mxu0 %vm2207_vm6, %v5401_v57 }
 0x244   : > { %4475 = vmatmul.mubr.msk.bf16.gmra.mrb[80].mxu1 %vm2207_vm6, %v5398_v54 }
 0x245   : > { %4478 = vmatprep.mubr.msk.bf16.mxu1 %vm2207_vm6, %v5401_v57  ;;  %4545 = vmatmul.mubr.msk.bf16.gmra.mrb[116].mxu0 %vm2207_vm6, %v5412_v46 }
 0x246   : > { %4548 = vmatprep.mubr.msk.bf16.mxu0 %vm2207_vm6, %v5415_v47 }
 0x24c   : > { %4479 = vmatmul.mubr.msk.bf16.gmra.mrb[84].mxu1 %vm2207_vm6, %v5412_v46 }
 0x24d   : > { %4482 = vmatprep.mubr.msk.bf16.mxu1 %vm2207_vm6, %v5415_v47  ;;  %4549 = vmatmul.mubr.msk.bf16.gmra.mrb[120].mxu0 %vm2207_vm6, %v5426_v8 }
 0x24e   : > { %4552 = vmatprep.mubr.msk.bf16.mxu0 %vm2207_vm6, %v5429_v3 }
 0x254   : > { %4483 = vmatmul.mubr.msk.bf16.gmra.mrb[88].mxu1 %vm2207_vm6, %v5426_v8 }
 0x255   : > { %4486 = vmatprep.mubr.msk.bf16.mxu1 %vm2207_vm6, %v5429_v3  ;;  %4553 = vmatmul.mubr.msk.bf16.gmra.mrb[124].mxu0 %vm2207_vm6, %v5440_v40 }
 0x256   : > { %4556 = vmatprep.mubr.msk.bf16.mxu0 %vm2207_vm6, %v5443_v32 }
 0x259   : > { %v4382_v17 = vpop.f32.mrb[72].mxu0 }
 0x25a   : > { %v2310_v23 = vpop.f32.mrb[73].mxu0  ;;  %v2551_v62 = vrot.slane %v4382_v17, 1 }
 0x25b   : > { %v4383_v56 = vpop.f32.mrb[74].mxu0  ;;  %v2549_v29 = vrot.slane %v2310_v23, 1 }
 0x25c   : > { %v2313_v61 = vpop.f32.mrb[75].mxu0  ;;  %4487 = vmatmul.mubr.msk.bf16.gmra.mrb[92].mxu1 %vm2207_vm6, %v5440_v40 }
 0x25d   : > { %v2550_v2 = vrot.slane %v2313_v61, 1  ;;  %4490 = vmatprep.mubr.msk.bf16.mxu1 %vm2207_vm6, %v5443_v32  ;;  %4557 = vmatmul.mubr.msk.bf16.gmra.mrb[128].mxu0 %vm2207_vm6, %v5452_v9 }
 0x25e   : > { %4560 = vmatprep.mubr.msk.bf16.mxu0 %vm2207_vm6, %v5459_v30 }
 0x25f   : > { %v5618_v10 = vsel %vm2597_vm8, %v2549_v29, %v2550_v2  ;;  %v5622_v22 = vsel %vm2597_vm8, %v2550_v2, %v2551_v62 }
 0x264   : > { %4491 = vmatmul.mubr.msk.bf16.gmra.mrb[96].mxu1 %vm2207_vm6, %v5452_v9 }
 0x265   : > { %4494 = vmatprep.mubr.msk.bf16.mxu1 %vm2207_vm6, %v5459_v30  ;;  %4561 = vmatmul.mubr.msk.bf16.gmra.mrb[132].mxu0 %vm2207_vm6, %v5466_v63 }
 0x266   : > { %4564 = vmatprep.mubr.msk.bf16.mxu0 %vm2207_vm6, %v5473_v28 }
 0x26c   : > { %4495 = vmatmul.mubr.msk.bf16.gmra.mrb[100].mxu1 %vm2207_vm6, %v5466_v63 }
 0x26d   : > { %4498 = vmatprep.mubr.msk.bf16.mxu1 %vm2207_vm6, %v5473_v28  ;;  %4565 = vmatmul.mubr.msk.bf16.gmra.mrb[136].mxu0 %vm2207_vm6, %v5480_v20 }
 0x26e   : > { %4568 = vmatprep.mubr.msk.bf16.mxu0 %vm2207_vm6, %v5494_v25 }
 0x271   : > { %v4394_v19 = vpop.f32.mrb[0].mxu1 }
 0x272   : > { %v2355_v24 = vpop.f32.mrb[1].mxu1  ;;  %v2560_v54 = vrot.slane %v4394_v19, 1 }
 0x273   : > { %v4395_v33 = vpop.f32.mrb[2].mxu1  ;;  %v2558_v57 = vrot.slane %v2355_v24, 1 }
 0x274   : > { %v2358_v36 = vpop.f32.mrb[3].mxu1  ;;  %4499 = vmatmul.mubr.msk.bf16.gmra.mrb[104].mxu1 %vm2207_vm6, %v5480_v20 }
 0x275   : > { %v2559_v46 = vrot.slane %v2358_v36, 1  ;;  %4502 = vmatprep.mubr.msk.bf16.mxu1 %vm2207_vm6, %v5494_v25  ;;  %4569 = vmatmul.mubr.msk.bf16.gmra.mrb[140].mxu0 %vm2207_vm6, %v5498_v35 }
 0x276   : > { %4572 = vmatprep.mubr.msk.bf16.mxu0 %vm2207_vm6, %v5513_v42 }
 0x277   : > { %v5650_v47 = vsel %vm2597_vm8, %v2558_v57, %v2559_v46  ;;  %v5654_v8 = vsel %vm2597_vm8, %v2559_v46, %v2560_v54 }
 0x278   : > { %v4386_v3 = vpop.f32.mrb[76].mxu0 }
 0x279   : > { %v2325_v40 = vpop.f32.mrb[77].mxu0  ;;  %v2554_v9 = vrot.slane %v4386_v3, 1 }
 0x27a   : > { %v4387_v32 = vpop.f32.mrb[78].mxu0  ;;  %v2552_v34 = vrot.slane %v2325_v40, 1 }
 0x27b   : > { %v2328_v43 = vpop.f32.mrb[79].mxu0 }
 0x27c   : > { %v2553_v52 = vrot.slane %v2328_v43, 1  ;;  %v4398_v30 = vpop.f32.mrb[4].mxu1  ;;  %4503 = vmatmul.mubr.msk.bf16.gmra.mrb[108].mxu1 %vm2207_vm6, %v5498_v35 }
 0x27d   : > { %v2370_v44 = vpop.f32.mrb[5].mxu1  ;;  %4506 = vmatprep.mubr.msk.bf16.mxu1 %vm2207_vm6, %v5513_v42  ;;  %4573 = vmatmul.mubr.msk.bf16.gmra.mrb[144].mxu0 %vm2207_vm6, %v5516_v13  ;;  %v2563_v37 = vrot.slane %v4398_v30, 1 }
 0x27e   : > { %v4399_v39 = vpop.f32.mrb[6].mxu1  ;;  %v5664_v48 = vsel %vm2597_vm8, %v2552_v34, %v2553_v52  ;;  %v5668_v21 = vsel %vm2597_vm8, %v2553_v52, %v2554_v9  ;;  %v2561_v50 = vrot.slane %v2370_v44, 1 }
 0x27f   : > { %v2373_v63 = vpop.f32.mrb[7].mxu1 }
 0x280   : > { %v2562_v58 = vrot.slane %v2373_v63, 1 }
 0x282   : > { %v5672_v0 = vsel %vm2597_vm8, %v2561_v50, %v2562_v58  ;;  %v5676_v28 = vsel %vm2597_vm8, %v2562_v58, %v2563_v37 }
 0x284   : > { %v4402_v4 = vpop.f32.mrb[8].mxu1  ;;  %4507 = vmatmul.mubr.msk.bf16.gmra.mrb[112].mxu1 %vm2207_vm6, %v5516_v13 }
 0x285   : > { %v2385_v12 = vpop.f32.mrb[9].mxu1  ;;  %v2566_v5 = vrot.slane %v4402_v4, 1 }
 0x286   : > { %v4403_v20 = vpop.f32.mrb[10].mxu1  ;;  %v2564_v15 = vrot.slane %v2385_v12, 1 }
 0x287   : > { %v2388_v6 = vpop.f32.mrb[11].mxu1 }
 0x288   : > { %v2565_v11 = vrot.slane %v2388_v6, 1 }
 0x28a   : > { %v5682_v49 = vsel %vm2597_vm8, %v2564_v15, %v2565_v11  ;;  %v5686_v14 = vsel %vm2597_vm8, %v2565_v11, %v2566_v5 }
 0x28c   : > { %v4406_v18 = vpop.f32.mrb[12].mxu1 }
 0x28d   : > { %v2400_v53 = vpop.f32.mrb[13].mxu1  ;;  %v2569_v25 = vrot.slane %v4406_v18, 1 }
 0x28e   : > { %v4407_v16 = vpop.f32.mrb[14].mxu1  ;;  %v2567_v51 = vrot.slane %v2400_v53, 1 }
 0x28f   : > { %v2403_v55 = vpop.f32.mrb[15].mxu1 }
 0x290   : > { %v2568_v35 = vrot.slane %v2403_v55, 1 }
 0x292   : > { %v5690_v45 = vsel %vm2597_vm8, %v2567_v51, %v2568_v35  ;;  %v5694_v27 = vsel %vm2597_vm8, %v2568_v35, %v2569_v25 }
 0x294   : > { %v4410_v26 = vpop.f32.mrb[16].mxu1 }
 0x295   : > { %v2415_v59 = vpop.f32.mrb[17].mxu1  ;;  %v2572_v38 = vrot.slane %v4410_v26, 1 }
 0x296   : > { %v4411_v31 = vpop.f32.mrb[18].mxu1  ;;  %v2570_v42 = vrot.slane %v2415_v59, 1 }
 0x297   : > { %v2418_v7 = vpop.f32.mrb[19].mxu1 }
 0x298   : > { %v2571_v13 = vrot.slane %v2418_v7, 1 }
 0x29a   : > { %v5698_v60 = vsel %vm2597_vm8, %v2570_v42, %v2571_v13  ;;  %v5702_v1 = vsel %vm2597_vm8, %v2571_v13, %v2572_v38 }
 0x29c   : > { %v4414_v17 = vpop.f32.mrb[20].mxu1 }
 0x29d   : > { %v2430_v23 = vpop.f32.mrb[21].mxu1  ;;  %v2575_v62 = vrot.slane %v4414_v17, 1 }
 0x29e   : > { %v4415_v56 = vpop.f32.mrb[22].mxu1  ;;  %v2573_v29 = vrot.slane %v2430_v23, 1 }
 0x29f   : > { %v2433_v61 = vpop.f32.mrb[23].mxu1 }
 0x2a0   : > { %v2574_v2 = vrot.slane %v2433_v61, 1 }
 0x2a2   : > { %v5706_v19 = vsel %vm2597_vm8, %v2573_v29, %v2574_v2  ;;  %v5710_v24 = vsel %vm2597_vm8, %v2574_v2, %v2575_v62 }
 0x2a4   : > { %v4418_v33 = vpop.f32.mrb[24].mxu1 }
 0x2a5   : > { %v2445_v36 = vpop.f32.mrb[25].mxu1  ;;  %v2578_v46 = vrot.slane %v4418_v33, 1 }
 0x2a6   : > { %v4419_v54 = vpop.f32.mrb[26].mxu1  ;;  %v2576_v3 = vrot.slane %v2445_v36, 1 }
 0x2a7   : > { %v2448_v57 = vpop.f32.mrb[27].mxu1 }
 0x2a8   : > { %v2577_v40 = vrot.slane %v2448_v57, 1 }
 0x2aa   : > { %v5714_v32 = vsel %vm2597_vm8, %v2576_v3, %v2577_v40  ;;  %v5718_v43 = vsel %vm2597_vm8, %v2577_v40, %v2578_v46 }
 0x2ac   : > { %v4422_v9 = vpop.f32.mrb[28].mxu1 }
 0x2ad   : > { %v2460_v34 = vpop.f32.mrb[29].mxu1  ;;  %v2581_v44 = vrot.slane %v4422_v9, 1 }
 0x2ae   : > { %v4423_v52 = vpop.f32.mrb[30].mxu1  ;;  %v2579_v39 = vrot.slane %v2460_v34, 1 }
 0x2af   : > { %v2463_v30 = vpop.f32.mrb[31].mxu1 }
 0x2b0   : > { %v2580_v63 = vrot.slane %v2463_v30, 1 }
 0x2b2   : > { %v5722_v37 = vsel %vm2597_vm8, %v2579_v39, %v2580_v63  ;;  %v5726_v50 = vsel %vm2597_vm8, %v2580_v63, %v2581_v44 }
 0x2b4   : > { %v4426_v58 = vpop.f32.mrb[32].mxu1 }
 0x2b5   : > { %v2475_v4 = vpop.f32.mrb[33].mxu1  ;;  %v2584_v6 = vrot.slane %v4426_v58, 1 }
 0x2b6   : > { %v4427_v12 = vpop.f32.mrb[34].mxu1  ;;  %v2582_v5 = vrot.slane %v2475_v4, 1 }
 0x2b7   : > { %v2478_v20 = vpop.f32.mrb[35].mxu1 }
 0x2b8   : > { %v2583_v15 = vrot.slane %v2478_v20, 1 }
 0x2ba   : > { %v5730_v11 = vsel %vm2597_vm8, %v2582_v5, %v2583_v15  ;;  %v5734_v18 = vsel %vm2597_vm8, %v2583_v15, %v2584_v6 }
 0x2bc   : > { %v4430_v53 = vpop.f32.mrb[36].mxu1 }
 0x2bd   : > { %v2490_v16 = vpop.f32.mrb[37].mxu1  ;;  %v2587_v51 = vrot.slane %v4430_v53, 1 }
 0x2be   : > { %v4431_v55 = vpop.f32.mrb[38].mxu1  ;;  %v2585_v35 = vrot.slane %v2490_v16, 1 }
 0x2bf   : > { %v2493_v25 = vpop.f32.mrb[39].mxu1 }
 0x2c0   : > { %v2586_v26 = vrot.slane %v2493_v25, 1 }
 0x2c2   : > { %v5738_v59 = vsel %vm2597_vm8, %v2585_v35, %v2586_v26  ;;  %v5742_v31 = vsel %vm2597_vm8, %v2586_v26, %v2587_v51 }
 0x2c4   : > { %v4434_v7 = vpop.f32.mrb[40].mxu1 }
 0x2c5   : > { %v2505_v38 = vpop.f32.mrb[41].mxu1  ;;  %v2590_v17 = vrot.slane %v4434_v7, 1 }
 0x2c6   : > { %v4435_v42 = vpop.f32.mrb[42].mxu1  ;;  %v2588_v23 = vrot.slane %v2505_v38, 1 }
 0x2c7   : > { %v2508_v13 = vpop.f32.mrb[43].mxu1 }
 0x2c8   : > { %v2589_v56 = vrot.slane %v2508_v13, 1 }
 0x2ca   : > { %v5746_v61 = vsel %vm2597_vm8, %v2588_v23, %v2589_v56  ;;  %v5750_v62 = vsel %vm2597_vm8, %v2589_v56, %v2590_v17 }
 0x2cf   : > { %v4438_v29 = vpop.f32.mrb[44].mxu1 }
 0x2d0   : > { %v4390_v2 = vpop.f32.mrb[80].mxu0  ;;  %v2520_v33 = vpop.f32.mrb[45].mxu1  ;;  %v2593_v3 = vrot.slane %v4438_v29, 1 }
 0x2d1   : > { %v2340_v36 = vpop.f32.mrb[81].mxu0  ;;  %v4439_v54 = vpop.f32.mrb[46].mxu1  ;;  %v2591_v40 = vrot.slane %v2520_v33, 1  ;;  %v2557_v52 = vrot.slane %v4390_v2, 1 }
 0x2d2   : > { %v4391_v57 = vpop.f32.mrb[82].mxu0  ;;  %v2523_v46 = vpop.f32.mrb[47].mxu1  ;;  %v2555_v30 = vrot.slane %v2340_v36, 1 }
 0x2d3   : > { %v2592_v9 = vrot.slane %v2523_v46, 1  ;;  %v2343_v34 = vpop.f32.mrb[83].mxu0  ;;  %v5785_v57 = vld [vmem:[%s6159_s6] ss:$0 sm:$0xff] }
 0x2d4   : > { %v2556_v44 = vrot.slane %v2343_v34, 1 }
 0x2d5   : > { %v5754_v39 = vsel %vm2597_vm8, %v2591_v40, %v2592_v9  ;;  %v5758_v63 = vsel %vm2597_vm8, %v2592_v9, %v2593_v3 }
 0x2d6   : > { %v5762_v58 = vsel %vm2597_vm8, %v2555_v30, %v2556_v44  ;;  %v5766_v4 = vsel %vm2597_vm8, %v2556_v44, %v2557_v52  ;;  %v5791_v52 = vld [vmem:[%s6160_s7] ss:$0 sm:$0xff] }
 0x2d7   : > { %v4442_v12 = vpop.f32.mrb[48].mxu1 }
 0x2d8   : > { %v2535_v20 = vpop.f32.mrb[49].mxu1  ;;  %v4514_v6 = vpop.f32.mrb[84].mxu0  ;;  %v2596_v55 = vrot.slane %v4442_v12, 1 }
 0x2d9   : > { %v4443_v5 = vpop.f32.mrb[50].mxu1  ;;  %v2940_v15 = vpop.f32.mrb[85].mxu0  ;;  %v2594_v25 = vrot.slane %v2535_v20, 1  ;;  %v3181_v26 = vrot.slane %v4514_v6, 2 }
 0x2da   : > { %v2538_v53 = vpop.f32.mrb[51].mxu1  ;;  %v4515_v16 = vpop.f32.mrb[86].mxu0  ;;  %v3179_v7 = vrot.slane %v2940_v15, 2 }
 0x2db   : > { %v2595_v51 = vrot.slane %v2538_v53, 1  ;;  %v2943_v35 = vpop.f32.mrb[87].mxu0 }
 0x2dc   : > { %v3180_v38 = vrot.slane %v2943_v35, 2 }
 0x2dd   : > { %v5771_v42 = vsel %vm2597_vm8, %v2594_v25, %v2595_v51  ;;  %v5775_v13 = vsel %vm2597_vm8, %v2595_v51, %v2596_v55 }
 0x2de   : > { %v3259_v17 = vsel %vm3227_vm9, %v3179_v7, %v3180_v38  ;;  %v3258_v23 = vsel %vm3227_vm9, %v3180_v38, %v3181_v26 }
 0x2df   : > { %v4448_v56 = vpop.f32.mrb[52].mxu1 }
 0x2e0   : > { %v2672_v29 = vpop.f32.mrb[53].mxu1  ;;  %v4518_v2 = vpop.f32.mrb[88].mxu0 }
 0x2e1   : > { %v2673_v33 = vadd.f32 %v2672_v29, %v5618_v10  ;;  %v4449_v36 = vpop.f32.mrb[54].mxu1  ;;  %v2955_v54 = vpop.f32.mrb[89].mxu0  ;;  %v3184_v30 = vrot.slane %v4518_v2, 2 }
 0x2e2   : > { %v2675_v46 = vpop.f32.mrb[55].mxu1  ;;  %v4519_v3 = vpop.f32.mrb[90].mxu0  ;;  %v3182_v10 = vrot.slane %v2955_v54, 2 }
 0x2e3   : > { %v3260_v40 = vadd.f32 %v3259_v17, %v2673_v33  ;;  %v2676_v9 = vadd.f32 %v2675_v46, %v5622_v22  ;;  %v2958_v34 = vpop.f32.mrb[91].mxu0 }
 0x2e4   : > { %v3183_v44 = vrot.slane %v2958_v34, 2 }
 0x2e5   : > { %v3299_v12 = vmul.f32 %v5785_v57, %v3260_v40  ;;  %v3261_v20 = vadd.f32 %v3258_v23, %v2676_v9 }
 0x2e6   : > { %v3257_v6 = vsel %vm3227_vm9, %v3182_v10, %v3183_v44  ;;  %v3256_v5 = vsel %vm3227_vm9, %v3183_v44, %v3184_v30 }
 0x2e7   : > { %v3338_v22 = vadd.f32 %v5791_v52, %v3299_v12  ;;  %v3300_v15 = vmul.f32 %v5785_v57, %v3261_v20  ;;  %v4452_v53 = vpop.f32.mrb[56].mxu1 }
 0x2e8   : > { %v2686_v16 = vpop.f32.mrb[57].mxu1  ;;  %v4522_v55 = vpop.f32.mrb[92].mxu0 }
 0x2e9   : > { %v3339_v25 = vadd.f32 %v5791_v52, %v3300_v15  ;;  %v2687_v51 = vadd.f32 %v2686_v16, %v5664_v48  ;;  %v4453_v35 = vpop.f32.mrb[58].mxu1  ;;  %v2970_v26 = vpop.f32.mrb[93].mxu0  ;;  %v3370_v17 = vmax.f32 %v3338_v22, 0.0  ;;  %v3187_v33 = vrot.slane %v4522_v55, 2 }
 0x2ea   : > { %v2689_v7 = vpop.f32.mrb[59].mxu1  ;;  %v4523_v38 = vpop.f32.mrb[94].mxu0  ;;  %v3185_v36 = vrot.slane %v2970_v26, 2 }
 0x2eb   : > { %v3371_v23 = vmax.f32 %v3339_v25, 0.0  ;;  %v3262_v56 = vadd.f32 %v3257_v6, %v2687_v51  ;;  %v2690_v29 = vadd.f32 %v2689_v7, %v5668_v21  ;;  %v2973_v2 = vpop.f32.mrb[95].mxu0 }
 0x2ec   : > { %v3186_v54 = vrot.slane %v2973_v2, 2 }
 0x2ed   : > { %v3301_v46 = vmul.f32 %v5785_v57, %v3262_v56  ;;  %v3263_v3 = vadd.f32 %v3256_v5, %v2690_v29  ;;  %v3402_v40 = vpack.c.bf16 %v3371_v23, %v3370_v17 }
 0x2ee   : > { %v3255_v48 = vsel %vm3227_vm9, %v3185_v36, %v3186_v54  ;;  %v3254_v9 = vsel %vm3227_vm9, %v3186_v54, %v3187_v33 }
 0x2ef   : > { %v3340_v34 = vadd.f32 %v5791_v52, %v3301_v46  ;;  %v3302_v30 = vmul.f32 %v5785_v57, %v3263_v3  ;;  %v4456_v10 = vpop.f32.mrb[60].mxu1  ;;  %4578 = vmatprep.mubr.msk.bf16.mxu1 %vm1709_vm2, %v3402_v40 }
 0x2f0   : > { %v2700_v21 = vpop.f32.mrb[61].mxu1  ;;  %v4526_v44 = vpop.f32.mrb[96].mxu0 }
 0x2f1   : > { %v3341_v12 = vadd.f32 %v5791_v52, %v3302_v30  ;;  %v2701_v20 = vadd.f32 %v2700_v21, %v5762_v58  ;;  %v4457_v6 = vpop.f32.mrb[62].mxu1  ;;  %v2985_v5 = vpop.f32.mrb[97].mxu0  ;;  %v3372_v53 = vmax.f32 %v3340_v34, 0.0  ;;  %v3190_v35 = vrot.slane %v4526_v44, 2 }
 0x2f2   : > { %v2703_v22 = vpop.f32.mrb[63].mxu1  ;;  %v4527_v15 = vpop.f32.mrb[98].mxu0  ;;  %v3188_v26 = vrot.slane %v2985_v5, 2 }
 0x2f3   : > { %v3373_v16 = vmax.f32 %v3341_v12, 0.0  ;;  %v3264_v55 = vadd.f32 %v3255_v48, %v2701_v20  ;;  %v2704_v25 = vadd.f32 %v2703_v22, %v5766_v4  ;;  %v2988_v51 = vpop.f32.mrb[99].mxu0 }
 0x2f4   : > { %v3189_v7 = vrot.slane %v2988_v51, 2 }
 0x2f5   : > { %v3403_v38 = vpack.c.bf16 %v3373_v16, %v3372_v53  ;;  %v3303_v17 = vmul.f32 %v5785_v57, %v3264_v55  ;;  %v3265_v23 = vadd.f32 %v3254_v9, %v2704_v25 }
 0x2f6   : > { %v3253_v58 = vsel %vm3227_vm9, %v3188_v26, %v3189_v7  ;;  %v3252_v56 = vsel %vm3227_vm9, %v3189_v7, %v3190_v35 }
 0x2f7   : > { %v3342_v29 = vadd.f32 %v5791_v52, %v3303_v17  ;;  %v3304_v2 = vmul.f32 %v5785_v57, %v3265_v23  ;;  %v4460_v33 = vpop.f32.mrb[64].mxu1  ;;  %4579 = vmatmul.mubr.msk.bf16.vlgmr.msra.gmra.mrb[116].mxu1 %vm1709_vm2, %v3403_v38 }
 0x2f8   : > { %v2714_v4 = vpop.f32.mrb[65].mxu1  ;;  %v4530_v36 = vpop.f32.mrb[100].mxu0 }
 0x2f9   : > { %v3343_v54 = vadd.f32 %v5791_v52, %v3304_v2  ;;  %v2715_v46 = vadd.f32 %v2714_v4, %v5650_v47  ;;  %v4461_v3 = vpop.f32.mrb[66].mxu1  ;;  %v3000_v40 = vpop.f32.mrb[101].mxu0  ;;  %v3374_v34 = vmax.f32 %v3342_v29, 0.0  ;;  %v3193_v12 = vrot.slane %v4530_v36, 2 }
 0x2fa   : > { %v2717_v48 = vpop.f32.mrb[67].mxu1  ;;  %v4531_v9 = vpop.f32.mrb[102].mxu0  ;;  %v3191_v20 = vrot.slane %v3000_v40, 2 }
 0x2fb   : > { %v3375_v30 = vmax.f32 %v3343_v54, 0.0  ;;  %v3266_v10 = vadd.f32 %v3253_v58, %v2715_v46  ;;  %v2718_v21 = vadd.f32 %v2717_v48, %v5654_v8  ;;  %v3003_v44 = vpop.f32.mrb[103].mxu0 }
 0x2fc   : > { %v3192_v6 = vrot.slane %v3003_v44, 2 }
 0x2fd   : > { %v3305_v5 = vmul.f32 %v5785_v57, %v3266_v10  ;;  %v3267_v22 = vadd.f32 %v3252_v56, %v2718_v21  ;;  %v3404_v15 = vpack.c.bf16 %v3375_v30, %v3374_v34 }
 0x2fe   : > { %v3251_v47 = vsel %vm3227_vm9, %v3191_v20, %v3192_v6  ;;  %v3250_v53 = vsel %vm3227_vm9, %v3192_v6, %v3193_v12 }
 0x2ff   : > { %v3344_v16 = vadd.f32 %v5791_v52, %v3305_v5  ;;  %v3306_v55 = vmul.f32 %v5785_v57, %v3267_v22  ;;  %v4464_v25 = vpop.f32.mrb[68].mxu1  ;;  %4582 = vmatprep.mubr.msk.bf16.mxu1 %vm1709_vm2, %v3404_v15 }
 0x300   : > { %v2728_v8 = vpop.f32.mrb[69].mxu1  ;;  %v4534_v51 = vpop.f32.mrb[104].mxu0 }
 0x301   : > { %v3345_v35 = vadd.f32 %v5791_v52, %v3306_v55  ;;  %v2729_v26 = vadd.f32 %v2728_v8, %v5672_v0  ;;  %v4465_v7 = vpop.f32.mrb[70].mxu1  ;;  %v3015_v38 = vpop.f32.mrb[105].mxu0  ;;  %v3376_v58 = vmax.f32 %v3344_v16, 0.0  ;;  %v3196_v4 = vrot.slane %v4534_v51, 2 }
 0x302   : > { %v2731_v17 = vpop.f32.mrb[71].mxu1  ;;  %v4535_v23 = vpop.f32.mrb[106].mxu0  ;;  %v3194_v36 = vrot.slane %v3015_v38, 2 }
 0x303   : > { %v3377_v56 = vmax.f32 %v3345_v35, 0.0  ;;  %v3268_v29 = vadd.f32 %v3251_v47, %v2729_v26  ;;  %v2732_v2 = vadd.f32 %v2731_v17, %v5676_v28  ;;  %v3018_v33 = vpop.f32.mrb[107].mxu0 }
 0x304   : > { %v3195_v54 = vrot.slane %v3018_v33, 2 }
 0x305   : > { %v3307_v46 = vmul.f32 %v5785_v57, %v3268_v29  ;;  %v3269_v3 = vadd.f32 %v3250_v53, %v2732_v2  ;;  %v3405_v40 = vpack.c.bf16 %v3377_v56, %v3376_v58 }
 0x306   : > { %v3249_v0 = vsel %vm3227_vm9, %v3194_v36, %v3195_v54  ;;  %v3248_v48 = vsel %vm3227_vm9, %v3195_v54, %v3196_v4 }
 0x307   : > { %v3346_v9 = vadd.f32 %v5791_v52, %v3307_v46  ;;  %v3308_v34 = vmul.f32 %v5785_v57, %v3269_v3  ;;  %v4468_v30 = vpop.f32.mrb[72].mxu1  ;;  %4583 = vmatmul.mubr.msk.bf16.gmra.mrb[120].mxu1 %vm1709_vm2, %v3405_v40 }
 0x308   : > { %v2742_v28 = vpop.f32.mrb[73].mxu1  ;;  %v4538_v10 = vpop.f32.mrb[108].mxu0 }
 0x309   : > { %v3347_v21 = vadd.f32 %v5791_v52, %v3308_v34  ;;  %v2743_v44 = vadd.f32 %v2742_v28, %v5682_v49  ;;  %v4469_v12 = vpop.f32.mrb[74].mxu1  ;;  %v3030_v20 = vpop.f32.mrb[109].mxu0  ;;  %v3378_v22 = vmax.f32 %v3346_v9, 0.0  ;;  %v3199_v55 = vrot.slane %v4538_v10, 2 }
 0x30a   : > { %v2745_v6 = vpop.f32.mrb[75].mxu1  ;;  %v4539_v5 = vpop.f32.mrb[110].mxu0  ;;  %v3197_v25 = vrot.slane %v3030_v20, 2 }
 0x30b   : > { %v3379_v15 = vmax.f32 %v3347_v21, 0.0  ;;  %v3270_v47 = vadd.f32 %v3249_v0, %v2743_v44  ;;  %v2746_v53 = vadd.f32 %v2745_v6, %v5686_v14  ;;  %v3033_v16 = vpop.f32.mrb[111].mxu0 }
 0x30c   : > { %v3198_v8 = vrot.slane %v3033_v16, 2 }
 0x30d   : > { %v3309_v51 = vmul.f32 %v5785_v57, %v3270_v47  ;;  %v3271_v35 = vadd.f32 %v3248_v48, %v2746_v53  ;;  %v3406_v26 = vpack.c.bf16 %v3379_v15, %v3378_v22 }
 0x30e   : > { %v3247_v49 = vsel %vm3227_vm9, %v3197_v25, %v3198_v8  ;;  %v3246_v7 = vsel %vm3227_vm9, %v3198_v8, %v3199_v55 }
 0x30f   : > { %v3348_v38 = vadd.f32 %v5791_v52, %v3309_v51  ;;  %v3310_v17 = vmul.f32 %v5785_v57, %v3271_v35  ;;  %v4472_v23 = vpop.f32.mrb[76].mxu1  ;;  %4586 = vmatprep.mubr.msk.bf16.mxu1 %vm1709_vm2, %v3406_v26 }
 0x310   : > { %v2756_v14 = vpop.f32.mrb[77].mxu1  ;;  %v4542_v58 = vpop.f32.mrb[112].mxu0 }
 0x311   : > { %v3349_v56 = vadd.f32 %v5791_v52, %v3310_v17  ;;  %v2757_v29 = vadd.f32 %v2756_v14, %v5690_v45  ;;  %v4473_v2 = vpop.f32.mrb[78].mxu1  ;;  %v3045_v33 = vpop.f32.mrb[113].mxu0  ;;  %v3380_v54 = vmax.f32 %v3348_v38, 0.0  ;;  %v3202_v48 = vrot.slane %v4542_v58, 2 }
 0x312   : > { %v2759_v4 = vpop.f32.mrb[79].mxu1  ;;  %v4543_v36 = vpop.f32.mrb[114].mxu0  ;;  %v3200_v9 = vrot.slane %v3045_v33, 2 }
 0x313   : > { %v3381_v46 = vmax.f32 %v3349_v56, 0.0  ;;  %v3272_v3 = vadd.f32 %v3247_v49, %v2757_v29  ;;  %v2760_v40 = vadd.f32 %v2759_v4, %v5694_v27  ;;  %v3048_v0 = vpop.f32.mrb[115].mxu0 }
 0x314   : > { %v3201_v34 = vrot.slane %v3048_v0, 2 }
 0x315   : > { %v3311_v30 = vmul.f32 %v5785_v57, %v3272_v3  ;;  %v3273_v28 = vadd.f32 %v3246_v7, %v2760_v40  ;;  %v3407_v10 = vpack.c.bf16 %v3381_v46, %v3380_v54 }
 0x316   : > { %v3245_v45 = vsel %vm3227_vm9, %v3200_v9, %v3201_v34  ;;  %v3244_v21 = vsel %vm3227_vm9, %v3201_v34, %v3202_v48 }
 0x317   : > { %v3350_v44 = vadd.f32 %v5791_v52, %v3311_v30  ;;  %v3312_v12 = vmul.f32 %v5785_v57, %v3273_v28  ;;  %v4476_v20 = vpop.f32.mrb[80].mxu1  ;;  %4587 = vmatmul.mubr.msk.bf16.gmra.mrb[124].mxu1 %vm1709_vm2, %v3407_v10 }
 0x318   : > { %v2770_v27 = vpop.f32.mrb[81].mxu1  ;;  %v4546_v6 = vpop.f32.mrb[116].mxu0 }
 0x319   : > { %v3351_v5 = vadd.f32 %v5791_v52, %v3312_v12  ;;  %v2771_v22 = vadd.f32 %v2770_v27, %v5698_v60  ;;  %v4477_v15 = vpop.f32.mrb[82].mxu1  ;;  %v3060_v47 = vpop.f32.mrb[117].mxu0  ;;  %v3382_v55 = vmax.f32 %v3350_v44, 0.0  ;;  %v3205_v26 = vrot.slane %v4546_v6, 2 }
 0x31a   : > { %v2773_v53 = vpop.f32.mrb[83].mxu1  ;;  %v4547_v16 = vpop.f32.mrb[118].mxu0  ;;  %v3203_v49 = vrot.slane %v3060_v47, 2 }
 0x31b   : > { %v3383_v25 = vmax.f32 %v3351_v5, 0.0  ;;  %v3274_v8 = vadd.f32 %v3245_v45, %v2771_v22  ;;  %v2774_v51 = vadd.f32 %v2773_v53, %v5702_v1  ;;  %v3063_v35 = vpop.f32.mrb[119].mxu0 }
 0x31c   : > { %v3204_v7 = vrot.slane %v3063_v35, 2 }
 0x31d   : > { %v3313_v38 = vmul.f32 %v5785_v57, %v3274_v8  ;;  %v3275_v17 = vadd.f32 %v3244_v21, %v2774_v51  ;;  %v3408_v23 = vpack.c.bf16 %v3383_v25, %v3382_v55 }
 0x31e   : > { %v3243_v60 = vsel %vm3227_vm9, %v3203_v49, %v3204_v7  ;;  %v3242_v14 = vsel %vm3227_vm9, %v3204_v7, %v3205_v26 }
 0x31f   : > { %v3352_v58 = vadd.f32 %v5791_v52, %v3313_v38  ;;  %v3314_v56 = vmul.f32 %v5785_v57, %v3275_v17  ;;  %v4480_v29 = vpop.f32.mrb[84].mxu1  ;;  %4590 = vmatprep.mubr.msk.bf16.mxu1 %vm1709_vm2, %v3408_v23 }
 0x320   : > { %v2784_v1 = vpop.f32.mrb[85].mxu1  ;;  %v4550_v2 = vpop.f32.mrb[120].mxu0 }
 0x321   : > { %v3353_v33 = vadd.f32 %v5791_v52, %v3314_v56  ;;  %v2785_v4 = vadd.f32 %v2784_v1, %v5706_v19  ;;  %v4481_v36 = vpop.f32.mrb[86].mxu1  ;;  %v3075_v54 = vpop.f32.mrb[121].mxu0  ;;  %v3384_v40 = vmax.f32 %v3352_v58, 0.0  ;;  %v3208_v30 = vrot.slane %v4550_v2, 2 }
 0x322   : > { %v2787_v46 = vpop.f32.mrb[87].mxu1  ;;  %v4551_v3 = vpop.f32.mrb[122].mxu0  ;;  %v3206_v28 = vrot.slane %v3075_v54, 2 }
 0x323   : > { %v3385_v0 = vmax.f32 %v3353_v33, 0.0  ;;  %v3276_v48 = vadd.f32 %v3243_v60, %v2785_v4  ;;  %v2788_v9 = vadd.f32 %v2787_v46, %v5710_v24  ;;  %v3078_v34 = vpop.f32.mrb[123].mxu0 }
 0x324   : > { %v3207_v10 = vrot.slane %v3078_v34, 2 }
 0x325   : > { %v3315_v45 = vmul.f32 %v5785_v57, %v3276_v48  ;;  %v3277_v21 = vadd.f32 %v3242_v14, %v2788_v9  ;;  %v3409_v44 = vpack.c.bf16 %v3385_v0, %v3384_v40 }
 0x326   : > { %v3241_v19 = vsel %vm3227_vm9, %v3206_v28, %v3207_v10  ;;  %v3240_v12 = vsel %vm3227_vm9, %v3207_v10, %v3208_v30 }
 0x327   : > { %v3354_v20 = vadd.f32 %v5791_v52, %v3315_v45  ;;  %v3316_v27 = vmul.f32 %v5785_v57, %v3277_v21  ;;  %v4484_v6 = vpop.f32.mrb[88].mxu1  ;;  %4591 = vmatmul.mubr.msk.bf16.gmra.mrb[128].mxu1 %vm1709_vm2, %v3409_v44 }
 0x328   : > { %v2798_v24 = vpop.f32.mrb[89].mxu1  ;;  %v4554_v5 = vpop.f32.mrb[124].mxu0 }
 0x329   : > { %v3355_v22 = vadd.f32 %v5791_v52, %v3316_v27  ;;  %v2799_v15 = vadd.f32 %v2798_v24, %v5714_v32  ;;  %v4485_v47 = vpop.f32.mrb[90].mxu1  ;;  %v3090_v53 = vpop.f32.mrb[125].mxu0  ;;  %v3386_v25 = vmax.f32 %v3354_v20, 0.0  ;;  %v3211_v49 = vrot.slane %v4554_v5, 2 }
 0x32a   : > { %v2801_v16 = vpop.f32.mrb[91].mxu1  ;;  %v4555_v55 = vpop.f32.mrb[126].mxu0  ;;  %v3209_v7 = vrot.slane %v3090_v53, 2 }
 0x32b   : > { %v3387_v8 = vmax.f32 %v3355_v22, 0.0  ;;  %v3278_v51 = vadd.f32 %v3241_v19, %v2799_v15  ;;  %v2802_v35 = vadd.f32 %v2801_v16, %v5718_v43  ;;  %v3093_v26 = vpop.f32.mrb[127].mxu0 }
 0x32c   : > { %v3210_v38 = vrot.slane %v3093_v26, 2 }
 0x32d   : > { %v3317_v17 = vmul.f32 %v5785_v57, %v3278_v51  ;;  %v3279_v23 = vadd.f32 %v3240_v12, %v2802_v35  ;;  %v3410_v60 = vpack.c.bf16 %v3387_v8, %v3386_v25 }
 0x32e   : > { %v3239_v32 = vsel %vm3227_vm9, %v3209_v7, %v3210_v38  ;;  %v3238_v14 = vsel %vm3227_vm9, %v3210_v38, %v3211_v49 }
 0x32f   : > { %v3356_v58 = vadd.f32 %v5791_v52, %v3317_v17  ;;  %v3318_v56 = vmul.f32 %v5785_v57, %v3279_v23  ;;  %v4488_v29 = vpop.f32.mrb[92].mxu1  ;;  %4594 = vmatprep.mubr.msk.bf16.mxu1 %vm1709_vm2, %v3410_v60 }
 0x330   : > { %v2812_v43 = vpop.f32.mrb[93].mxu1  ;;  %v4558_v1 = vpop.f32.mrb[128].mxu0 }
 0x331   : > { %v3357_v2 = vadd.f32 %v5791_v52, %v3318_v56  ;;  %v2813_v33 = vadd.f32 %v2812_v43, %v5722_v37  ;;  %v4489_v4 = vpop.f32.mrb[94].mxu1  ;;  %v3105_v36 = vpop.f32.mrb[129].mxu0  ;;  %v3388_v3 = vmax.f32 %v3356_v58, 0.0  ;;  %v3214_v34 = vrot.slane %v4558_v1, 2 }
 0x332   : > { %v2815_v54 = vpop.f32.mrb[95].mxu1  ;;  %v4559_v46 = vpop.f32.mrb[130].mxu0  ;;  %v3212_v30 = vrot.slane %v3105_v36, 2 }
 0x333   : > { %v3389_v40 = vmax.f32 %v3357_v2, 0.0  ;;  %v3280_v0 = vadd.f32 %v3239_v32, %v2813_v33  ;;  %v2816_v48 = vadd.f32 %v2815_v54, %v5726_v50  ;;  %v3108_v9 = vpop.f32.mrb[131].mxu0 }
 0x334   : > { %v3213_v28 = vrot.slane %v3108_v9, 2 }
 0x335   : > { %v3319_v10 = vmul.f32 %v5785_v57, %v3280_v0  ;;  %v3281_v45 = vadd.f32 %v3238_v14, %v2816_v48  ;;  %v3411_v21 = vpack.c.bf16 %v3389_v40, %v3388_v3 }
 0x336   : > { %v3237_v37 = vsel %vm3227_vm9, %v3212_v30, %v3213_v28  ;;  %v3236_v44 = vsel %vm3227_vm9, %v3213_v28, %v3214_v34 }
 0x337   : > { %v3358_v19 = vadd.f32 %v5791_v52, %v3319_v10  ;;  %v3320_v12 = vmul.f32 %v5785_v57, %v3281_v45  ;;  %v4492_v20 = vpop.f32.mrb[96].mxu1  ;;  %4595 = vmatmul.mubr.msk.bf16.gmra.mrb[132].mxu1 %vm1709_vm2, %v3411_v21 }
 0x338   : > { %v2826_v50 = vpop.f32.mrb[97].mxu1  ;;  %v4562_v27 = vpop.f32.mrb[132].mxu0 }
 0x339   : > { %v3359_v6 = vadd.f32 %v5791_v52, %v3320_v12  ;;  %v2827_v24 = vadd.f32 %v2826_v50, %v5730_v11  ;;  %v4493_v5 = vpop.f32.mrb[98].mxu1  ;;  %v3120_v22 = vpop.f32.mrb[133].mxu0  ;;  %v3390_v53 = vmax.f32 %v3358_v19, 0.0  ;;  %v3217_v51 = vrot.slane %v4562_v27, 2 }
 0x33a   : > { %v2829_v15 = vpop.f32.mrb[99].mxu1  ;;  %v4563_v47 = vpop.f32.mrb[134].mxu0  ;;  %v3215_v35 = vrot.slane %v3120_v22, 2 }
 0x33b   : > { %v3391_v16 = vmax.f32 %v3359_v6, 0.0  ;;  %v3282_v55 = vadd.f32 %v3237_v37, %v2827_v24  ;;  %v2830_v25 = vadd.f32 %v2829_v15, %v5734_v18  ;;  %v3123_v8 = vpop.f32.mrb[135].mxu0 }
 0x33c   : > { %v3216_v26 = vrot.slane %v3123_v8, 2 }
 0x33d   : > { %v3321_v49 = vmul.f32 %v5785_v57, %v3282_v55  ;;  %v3283_v7 = vadd.f32 %v3236_v44, %v2830_v25  ;;  %v3412_v38 = vpack.c.bf16 %v3391_v16, %v3390_v53 }
 0x33e   : > { %v3235_v11 = vsel %vm3227_vm9, %v3215_v35, %v3216_v26  ;;  %v3234_v17 = vsel %vm3227_vm9, %v3216_v26, %v3217_v51 }
 0x33f   : > { %v3360_v23 = vadd.f32 %v5791_v52, %v3321_v49  ;;  %v3322_v60 = vmul.f32 %v5785_v57, %v3283_v7  ;;  %v4496_v32 = vpop.f32.mrb[100].mxu1  ;;  %4598 = vmatprep.mubr.msk.bf16.mxu1 %vm1709_vm2, %v3412_v38 }
 0x340   : > { %v2840_v18 = vpop.f32.mrb[101].mxu1  ;;  %v4566_v14 = vpop.f32.mrb[136].mxu0 }
 0x341   : > { %v3361_v58 = vadd.f32 %v5791_v52, %v3322_v60  ;;  %v2841_v56 = vadd.f32 %v2840_v18, %v5738_v59  ;;  %v4497_v29 = vpop.f32.mrb[102].mxu1  ;;  %v3135_v43 = vpop.f32.mrb[137].mxu0  ;;  %v3392_v33 = vmax.f32 %v3360_v23, 0.0  ;;  %v3220_v3 = vrot.slane %v4566_v14, 2 }
 0x342   : > { %v2843_v1 = vpop.f32.mrb[103].mxu1  ;;  %v4567_v2 = vpop.f32.mrb[138].mxu0  ;;  %v3218_v40 = vrot.slane %v3135_v43, 2 }
 0x343   : > { %v3393_v4 = vmax.f32 %v3361_v58, 0.0  ;;  %v3284_v36 = vadd.f32 %v3235_v11, %v2841_v56  ;;  %v2844_v54 = vadd.f32 %v2843_v1, %v5742_v31  ;;  %v3138_v46 = vpop.f32.mrb[139].mxu0 }
 0x344   : > { %v3219_v0 = vrot.slane %v3138_v46, 2 }
 0x345   : > { %v3323_v48 = vmul.f32 %v5785_v57, %v3284_v36  ;;  %v3285_v9 = vadd.f32 %v3234_v17, %v2844_v54  ;;  %v3413_v34 = vpack.c.bf16 %v3393_v4, %v3392_v33 }
 0x346   : > { %v3233_v59 = vsel %vm3227_vm9, %v3218_v40, %v3219_v0  ;;  %v3232_v30 = vsel %vm3227_vm9, %v3219_v0, %v3220_v3 }
 0x347   : > { %v3362_v28 = vadd.f32 %v5791_v52, %v3323_v48  ;;  %v3324_v10 = vmul.f32 %v5785_v57, %v3285_v9  ;;  %v4500_v45 = vpop.f32.mrb[104].mxu1  ;;  %4599 = vmatmul.mubr.msk.bf16.gmra.mrb[136].mxu1 %vm1709_vm2, %v3413_v34 }
 0x348   : > { %v2854_v31 = vpop.f32.mrb[105].mxu1  ;;  %v4570_v21 = vpop.f32.mrb[140].mxu0 }
 0x349   : > { %v3363_v37 = vadd.f32 %v5791_v52, %v3324_v10  ;;  %v2855_v44 = vadd.f32 %v2854_v31, %v5746_v61  ;;  %v4501_v19 = vpop.f32.mrb[106].mxu1  ;;  %v3150_v12 = vpop.f32.mrb[141].mxu0  ;;  %v3394_v27 = vmax.f32 %v3362_v28, 0.0  ;;  %v3223_v15 = vrot.slane %v4570_v21, 2 }
 0x34a   : > { %v2857_v20 = vpop.f32.mrb[107].mxu1  ;;  %v4571_v50 = vpop.f32.mrb[142].mxu0  ;;  %v3221_v47 = vrot.slane %v3150_v12, 2 }
 0x34b   : > { %v3395_v6 = vmax.f32 %v3363_v37, 0.0  ;;  %v3286_v24 = vadd.f32 %v3233_v59, %v2855_v44  ;;  %v2858_v5 = vadd.f32 %v2857_v20, %v5750_v62  ;;  %v3153_v22 = vpop.f32.mrb[143].mxu0  ;;  %v3712_v50 = vld [vmem:[%s5972_s16 + $0x10] sm:$0xff] }
 0x34c   : > { %v3222_v53 = vrot.slane %v3153_v22, 2 }
 0x34d   : > { %v3325_v16 = vmul.f32 %v5785_v57, %v3286_v24  ;;  %v3287_v55 = vadd.f32 %v3232_v30, %v2858_v5  ;;  %v3414_v25 = vpack.c.bf16 %v3395_v6, %v3394_v27  ;;  %v3710_v5 = vld [vmem:[%s5972_s16] sm:$0xff] }
 0x34e   : > { %v3231_v61 = vsel %vm3227_vm9, %v3221_v47, %v3222_v53  ;;  %v3230_v8 = vsel %vm3227_vm9, %v3222_v53, %v3223_v15  ;;  %v3713_v53 = vld [vmem:[%s5972_s16 + $0x18] sm:$0xff] }
 0x34f   : > { %v3364_v51 = vadd.f32 %v5791_v52, %v3325_v16  ;;  %v3326_v35 = vmul.f32 %v5785_v57, %v3287_v55  ;;  %v4504_v26 = vpop.f32.mrb[108].mxu1  ;;  %4602 = vmatprep.mubr.msk.bf16.mxu1 %vm1709_vm2, %v3414_v25 }
 0x350   : > { %v2868_v62 = vpop.f32.mrb[109].mxu1  ;;  %v4574_v49 = vpop.f32.mrb[144].mxu0 }
 0x351   : > { %v3365_v7 = vadd.f32 %v5791_v52, %v3326_v35  ;;  %v2869_v38 = vadd.f32 %v2868_v62, %v5754_v39  ;;  %v4505_v11 = vpop.f32.mrb[110].mxu1  ;;  %v3165_v17 = vpop.f32.mrb[145].mxu0  ;;  %v3396_v32 = vmax.f32 %v3364_v51, 0.0  ;;  %v3226_v29 = vrot.slane %v4574_v49, 2 }
 0x352   : > { %v2871_v23 = vpop.f32.mrb[111].mxu1  ;;  %v4575_v60 = vpop.f32.mrb[146].mxu0  ;;  %v3224_v43 = vrot.slane %v3165_v17, 2 }
 0x353   : > { %v3397_v18 = vmax.f32 %v3365_v7, 0.0  ;;  %v3288_v14 = vadd.f32 %v3231_v61, %v2869_v38  ;;  %v2872_v58 = vadd.f32 %v2871_v23, %v5758_v63  ;;  %v3168_v56 = vpop.f32.mrb[147].mxu0  ;;  %v3711_v61 = vld [vmem:[%s5972_s16 + $0x8] sm:$0xff]  ;;  %v3716_v60 = vld [vmem:[%s5972_s16 + $0x30] sm:$0xff] }
 0x354   : > { %v3225_v1 = vrot.slane %v3168_v56, 2 }
 0x355   : > { %v3327_v2 = vmul.f32 %v5785_v57, %v3288_v14  ;;  %v3289_v33 = vadd.f32 %v3230_v8, %v2872_v58  ;;  %v3415_v4 = vpack.c.bf16 %v3397_v18, %v3396_v32  ;;  %v3714_v58 = vld [vmem:[%s5972_s16 + $0x20] sm:$0xff] }
 0x356   : > { %v3229_v39 = vsel %vm3227_vm9, %v3224_v43, %v3225_v1  ;;  %v3228_v36 = vsel %vm3227_vm9, %v3225_v1, %v3226_v29  ;;  %v3717_v1 = vld [vmem:[%s5972_s16 + $0x38] sm:$0xff] }
 0x357   : > { %v3366_v54 = vadd.f32 %v5791_v52, %v3327_v2  ;;  %v3328_v46 = vmul.f32 %v5785_v57, %v3289_v33  ;;  %v4508_v3 = vpop.f32.mrb[112].mxu1  ;;  %4603 = vmatmul.mubr.msk.bf16.gmra.mrb[140].mxu1 %vm1709_vm2, %v3415_v4 }
 0x358   : > { %v2882_v63 = vpop.f32.mrb[113].mxu1 }
 0x359   : > { %v3367_v40 = vadd.f32 %v5791_v52, %v3328_v46  ;;  %v2883_v0 = vadd.f32 %v2882_v63, %v5771_v42  ;;  %v4509_v48 = vpop.f32.mrb[114].mxu1  ;;  %v3398_v34 = vmax.f32 %v3366_v54, 0.0 }
 0x35a   : > { %v2885_v9 = vpop.f32.mrb[115].mxu1 }
 0x35b   : > { %v3399_v59 = vmax.f32 %v3367_v40, 0.0  ;;  %v3290_v30 = vadd.f32 %v3229_v39, %v2883_v0  ;;  %v2886_v41 = vadd.f32 %v2885_v9, %v5775_v13  ;;  %v5967_v13 = vld [vmem:[%s6162_s9] ss:$0 sm:$0xff]  ;;  %v3715_v39 = vld [vmem:[%s5972_s16 + $0x28] sm:$0xff] }
 0x35d   : > { %v3329_v28 = vmul.f32 %v5785_v57, %v3290_v30  ;;  %v3291_v10 = vadd.f32 %v3228_v36, %v2886_v41  ;;  %v3416_v45 = vpack.c.bf16 %v3399_v59, %v3398_v34  ;;  %v3720_v30 = vld [vmem:[%s5972_s16 + $0x50] sm:$0xff] }
 0x35f   : > { %v3368_v31 = vadd.f32 %v5791_v52, %v3329_v28  ;;  %v3330_v21 = vmul.f32 %v5785_v57, %v3291_v10  ;;  %4606 = vmatprep.mubr.msk.bf16.mxu1 %vm1709_vm2, %v3416_v45  ;;  %v3718_v45 = vld [vmem:[%s5972_s16 + $0x40] sm:$0xff] }
 0x361   : > { %v3369_v42 = vadd.f32 %v5791_v52, %v3330_v21  ;;  %v3400_v37 = vmax.f32 %v3368_v31, 0.0  ;;  %v5977_v52 = vld [vmem:[%s6163_s10] ss:$0 sm:$0xff] }
 0x363   : > { %v3401_v44 = vmax.f32 %v3369_v42, 0.0 }
 0x365   : > { %v3417_v19 = vpack.c.bf16 %v3401_v44, %v3400_v37  ;;  %v3721_v37 = vld [vmem:[%s5972_s16 + $0x58] sm:$0xff] }
 0x367   : > { %4607 = vmatmul.mubr.msk.bf16.gmra.mrb[144].mxu1 %vm1709_vm2, %v3417_v19 }
 0x3ca   : > { %v4580_v57 = vpop.f32.mrb[116].mxu1 }
 0x3cb   : > { %v3641_v12 = vmul.f32 %v4580_v57, %v5967_v13  ;;  %v3505_v20 = vpop.f32.mrb[117].mxu1 }
 0x3cc   : > { %v3639_v27 = vmul.f32 %v5967_v13, %v3505_v20  ;;  %v4581_v6 = vpop.f32.mrb[118].mxu1 }
 0x3cd   : > { %v3680_v24 = vadd.f32 %v5977_v52, %v3641_v12  ;;  %v3642_v22 = vmul.f32 %v4581_v6, %v5967_v13  ;;  %v3508_v15 = vpop.f32.mrb[119].mxu1  ;;  %v3719_v12 = vld [vmem:[%s5972_s16 + $0x48] sm:$0xff] }
 0x3ce   : > { %v3678_v47 = vadd.f32 %v5977_v52, %v3639_v27  ;;  %v3640_v16 = vmul.f32 %v5967_v13, %v3508_v15 }
 0x3cf   : > { %v3744_v55 = vadd.f32 %v3712_v50, %v3680_v24  ;;  %v3681_v25 = vadd.f32 %v5977_v52, %v3642_v22 }
 0x3d0   : > { %v3742_v8 = vadd.f32 %v3710_v5, %v3678_v47  ;;  %v3679_v51 = vadd.f32 %v5977_v52, %v3640_v16 }
 0x3d1   : > { %v3776_v35 = vmax.f32 %v3744_v55, 0.0  ;;  %v3745_v26 = vadd.f32 %v3713_v53, %v3681_v25  ;;  %v3724_v55 = vld [vmem:[%s5972_s16 + $0x70] sm:$0xff] }
 0x3d2   : > { %v3774_v62 = vmax.f32 %v3742_v8, 0.0  ;;  %v3743_v49 = vadd.f32 %v3711_v61, %v3679_v51  ;;  %v3722_v51 = vld [vmem:[%s5972_s16 + $0x60] sm:$0xff] }
 0x3d3   : > { %3808 = vst.msk [vmem:[%s5993_s24 + $0x10] sm:$0xff] %vm711_vm0, %v3776_v35  ;;  %v3777_v7 = vmax.f32 %v3745_v26, 0.0 }
 0x3d4   : > { %3806 = vst.msk [vmem:[%s5993_s24] sm:$0xff] %vm711_vm0, %v3774_v62  ;;  %v3775_v38 = vmax.f32 %v3743_v49, 0.0  ;;  %v3725_v49 = vld [vmem:[%s5972_s16 + $0x78] sm:$0xff] }
 0x3d5   : > { %3809 = vst.msk [vmem:[%s5993_s24 + $0x18] sm:$0xff] %vm711_vm0, %v3777_v7 }
 0x3d6   : > { %3807 = vst.msk [vmem:[%s5993_s24 + $0x8] sm:$0xff] %vm711_vm0, %v3775_v38 }
 0x3da   : > { %v4584_v11 = vpop.f32.mrb[120].mxu1 }
 0x3db   : > { %v3645_v17 = vmul.f32 %v4584_v11, %v5967_v13  ;;  %v3521_v23 = vpop.f32.mrb[121].mxu1 }
 0x3dc   : > { %v3643_v32 = vmul.f32 %v5967_v13, %v3521_v23  ;;  %v4585_v18 = vpop.f32.mrb[122].mxu1 }
 0x3dd   : > { %v3684_v14 = vadd.f32 %v5977_v52, %v3645_v17  ;;  %v3646_v56 = vmul.f32 %v4585_v18, %v5967_v13  ;;  %v3524_v29 = vpop.f32.mrb[123].mxu1  ;;  %v3723_v17 = vld [vmem:[%s5972_s16 + $0x68] sm:$0xff] }
 0x3de   : > { %v3682_v43 = vadd.f32 %v5977_v52, %v3643_v32  ;;  %v3644_v2 = vmul.f32 %v5967_v13, %v3524_v29 }
 0x3df   : > { %v3748_v33 = vadd.f32 %v3716_v60, %v3684_v14  ;;  %v3685_v4 = vadd.f32 %v5977_v52, %v3646_v56 }
 0x3e0   : > { %v3746_v36 = vadd.f32 %v3714_v58, %v3682_v43  ;;  %v3683_v54 = vadd.f32 %v5977_v52, %v3644_v2 }
 0x3e1   : > { %v3780_v46 = vmax.f32 %v3748_v33, 0.0  ;;  %v3749_v3 = vadd.f32 %v3717_v1, %v3685_v4  ;;  %v3728_v33 = vld [vmem:[%s5972_s16 + $0x90] sm:$0xff] }
 0x3e2   : > { %v3778_v63 = vmax.f32 %v3746_v36, 0.0  ;;  %v3747_v40 = vadd.f32 %v3715_v39, %v3683_v54  ;;  %v3726_v54 = vld [vmem:[%s5972_s16 + $0x80] sm:$0xff] }
 0x3e3   : > { %3812 = vst.msk [vmem:[%s5993_s24 + $0x30] sm:$0xff] %vm711_vm0, %v3780_v46  ;;  %v3781_v0 = vmax.f32 %v3749_v3, 0.0 }
 0x3e4   : > { %3810 = vst.msk [vmem:[%s5993_s24 + $0x20] sm:$0xff] %vm711_vm0, %v3778_v63  ;;  %v3779_v48 = vmax.f32 %v3747_v40, 0.0  ;;  %v3729_v40 = vld [vmem:[%s5972_s16 + $0x98] sm:$0xff] }
 0x3e5   : > { %3813 = vst.msk [vmem:[%s5993_s24 + $0x38] sm:$0xff] %vm711_vm0, %v3781_v0 }
 0x3e6   : > { %3811 = vst.msk [vmem:[%s5993_s24 + $0x28] sm:$0xff] %vm711_vm0, %v3779_v48 }
 0x3ea   : > { %v4588_v9 = vpop.f32.mrb[124].mxu1 }
 0x3eb   : > { %v3649_v34 = vmul.f32 %v4588_v9, %v5967_v13  ;;  %v3537_v59 = vpop.f32.mrb[125].mxu1 }
 0x3ec   : > { %v3647_v41 = vmul.f32 %v5967_v13, %v3537_v59  ;;  %v4589_v28 = vpop.f32.mrb[126].mxu1 }
 0x3ed   : > { %v3688_v10 = vadd.f32 %v5977_v52, %v3649_v34  ;;  %v3650_v31 = vmul.f32 %v4589_v28, %v5967_v13  ;;  %v3540_v21 = vpop.f32.mrb[127].mxu1  ;;  %v3727_v34 = vld [vmem:[%s5972_s16 + $0x88] sm:$0xff] }
 0x3ee   : > { %v3686_v42 = vadd.f32 %v5977_v52, %v3647_v41  ;;  %v3648_v44 = vmul.f32 %v5967_v13, %v3540_v21 }
 0x3ef   : > { %v3752_v19 = vadd.f32 %v3720_v30, %v3688_v10  ;;  %v3689_v57 = vadd.f32 %v5977_v52, %v3650_v31 }
 0x3f0   : > { %v3750_v20 = vadd.f32 %v3718_v45, %v3686_v42  ;;  %v3687_v50 = vadd.f32 %v5977_v52, %v3648_v44 }
 0x3f1   : > { %v3784_v27 = vmax.f32 %v3752_v19, 0.0  ;;  %v3753_v6 = vadd.f32 %v3721_v37, %v3689_v57  ;;  %v3732_v19 = vld [vmem:[%s5972_s16 + $0xb0] sm:$0xff] }
 0x3f2   : > { %v3782_v24 = vmax.f32 %v3750_v20, 0.0  ;;  %v3751_v5 = vadd.f32 %v3719_v12, %v3687_v50  ;;  %v3730_v50 = vld [vmem:[%s5972_s16 + $0xa0] sm:$0xff] }
 0x3f3   : > { %3816 = vst.msk [vmem:[%s5993_s24 + $0x50] sm:$0xff] %vm711_vm0, %v3784_v27  ;;  %v3785_v22 = vmax.f32 %v3753_v6, 0.0 }
 0x3f4   : > { %3814 = vst.msk [vmem:[%s5993_s24 + $0x40] sm:$0xff] %vm711_vm0, %v3782_v24  ;;  %v3783_v15 = vmax.f32 %v3751_v5, 0.0  ;;  %v3733_v5 = vld [vmem:[%s5972_s16 + $0xb8] sm:$0xff] }
 0x3f5   : > { %3817 = vst.msk [vmem:[%s5993_s24 + $0x58] sm:$0xff] %vm711_vm0, %v3785_v22 }
 0x3f6   : > { %3815 = vst.msk [vmem:[%s5993_s24 + $0x48] sm:$0xff] %vm711_vm0, %v3783_v15 }
 0x3fa   : > { %v4592_v47 = vpop.f32.mrb[128].mxu1 }
 0x3fb   : > { %v3653_v53 = vmul.f32 %v4592_v47, %v5967_v13  ;;  %v3553_v16 = vpop.f32.mrb[129].mxu1 }
 0x3fc   : > { %v3651_v25 = vmul.f32 %v5967_v13, %v3553_v16  ;;  %v4593_v61 = vpop.f32.mrb[130].mxu1 }
 0x3fd   : > { %v3692_v8 = vadd.f32 %v5977_v52, %v3653_v53  ;;  %v3654_v35 = vmul.f32 %v4593_v61, %v5967_v13  ;;  %v3556_v26 = vpop.f32.mrb[131].mxu1  ;;  %v3731_v53 = vld [vmem:[%s5972_s16 + $0xa8] sm:$0xff] }
 0x3fe   : > { %v3690_v62 = vadd.f32 %v5977_v52, %v3651_v25  ;;  %v3652_v7 = vmul.f32 %v5967_v13, %v3556_v26 }
 0x3ff   : > { %v3756_v38 = vadd.f32 %v3724_v55, %v3692_v8  ;;  %v3693_v11 = vadd.f32 %v5977_v52, %v3654_v35 }
 0x400   : > { %v3754_v23 = vadd.f32 %v3722_v51, %v3690_v62  ;;  %v3691_v60 = vadd.f32 %v5977_v52, %v3652_v7 }
 0x401   : > { %v3788_v32 = vmax.f32 %v3756_v38, 0.0  ;;  %v3757_v18 = vadd.f32 %v3725_v49, %v3693_v11  ;;  %v3736_v38 = vld [vmem:[%s5972_s16 + $0xd0] sm:$0xff] }
 0x402   : > { %v3786_v14 = vmax.f32 %v3754_v23, 0.0  ;;  %v3755_v58 = vadd.f32 %v3723_v17, %v3691_v60  ;;  %v3734_v60 = vld [vmem:[%s5972_s16 + $0xc0] sm:$0xff] }
 0x403   : > { %3820 = vst.msk [vmem:[%s5993_s24 + $0x70] sm:$0xff] %vm711_vm0, %v3788_v32  ;;  %v3789_v56 = vmax.f32 %v3757_v18, 0.0 }
 0x404   : > { %3818 = vst.msk [vmem:[%s5993_s24 + $0x60] sm:$0xff] %vm711_vm0, %v3786_v14  ;;  %v3787_v29 = vmax.f32 %v3755_v58, 0.0  ;;  %v3737_v58 = vld [vmem:[%s5972_s16 + $0xd8] sm:$0xff] }
 0x405   : > { %3821 = vst.msk [vmem:[%s5993_s24 + $0x78] sm:$0xff] %vm711_vm0, %v3789_v56 }
 0x406   : > { %3819 = vst.msk [vmem:[%s5993_s24 + $0x68] sm:$0xff] %vm711_vm0, %v3787_v29 }
 0x40a   : > { %v4596_v43 = vpop.f32.mrb[132].mxu1 }
 0x40b   : > { %v3657_v1 = vmul.f32 %v4596_v43, %v5967_v13  ;;  %v3569_v2 = vpop.f32.mrb[133].mxu1 }
 0x40c   : > { %v3655_v4 = vmul.f32 %v5967_v13, %v3569_v2  ;;  %v4597_v39 = vpop.f32.mrb[134].mxu1 }
 0x40d   : > { %v3696_v36 = vadd.f32 %v5977_v52, %v3657_v1  ;;  %v3658_v46 = vmul.f32 %v4597_v39, %v5967_v13  ;;  %v3572_v3 = vpop.f32.mrb[135].mxu1  ;;  %v3735_v1 = vld [vmem:[%s5972_s16 + $0xc8] sm:$0xff] }
 0x40e   : > { %v3694_v63 = vadd.f32 %v5977_v52, %v3655_v4  ;;  %v3656_v0 = vmul.f32 %v5967_v13, %v3572_v3 }
 0x40f   : > { %v3760_v48 = vadd.f32 %v3728_v33, %v3696_v36  ;;  %v3697_v9 = vadd.f32 %v5977_v52, %v3658_v46 }
 0x410   : > { %v3758_v59 = vadd.f32 %v3726_v54, %v3694_v63  ;;  %v3695_v30 = vadd.f32 %v5977_v52, %v3656_v0 }
 0x411   : > { %v3792_v41 = vmax.f32 %v3760_v48, 0.0  ;;  %v3761_v28 = vadd.f32 %v3729_v40, %v3697_v9  ;;  %v3740_v48 = vld [vmem:[%s5972_s16 + $0xf0] sm:$0xff] }
 0x412   : > { %v3790_v10 = vmax.f32 %v3758_v59, 0.0  ;;  %v3759_v45 = vadd.f32 %v3727_v34, %v3695_v30  ;;  %v3738_v30 = vld [vmem:[%s5972_s16 + $0xe0] sm:$0xff] }
 0x413   : > { %3824 = vst.msk [vmem:[%s5993_s24 + $0x90] sm:$0xff] %vm711_vm0, %v3792_v41  ;;  %v3793_v31 = vmax.f32 %v3761_v28, 0.0 }
 0x414   : > { %3822 = vst.msk [vmem:[%s5993_s24 + $0x80] sm:$0xff] %vm711_vm0, %v3790_v10  ;;  %v3791_v21 = vmax.f32 %v3759_v45, 0.0  ;;  %v3741_v45 = vld [vmem:[%s5972_s16 + $0xf8] sm:$0xff] }
 0x415   : > { %3825 = vst.msk [vmem:[%s5993_s24 + $0x98] sm:$0xff] %vm711_vm0, %v3793_v31 }
 0x416   : > { %3823 = vst.msk [vmem:[%s5993_s24 + $0x88] sm:$0xff] %vm711_vm0, %v3791_v21 }
 0x41a   : > { %v4600_v42 = vpop.f32.mrb[136].mxu1 }
 0x41b   : > { %v3661_v37 = vmul.f32 %v4600_v42, %v5967_v13  ;;  %v3585_v44 = vpop.f32.mrb[137].mxu1 }
 0x41c   : > { %v3659_v57 = vmul.f32 %v5967_v13, %v3585_v44  ;;  %v4601_v12 = vpop.f32.mrb[138].mxu1 }
 0x41d   : > { %v3700_v20 = vadd.f32 %v5977_v52, %v3661_v37  ;;  %v3662_v27 = vmul.f32 %v4601_v12, %v5967_v13  ;;  %v3588_v6 = vpop.f32.mrb[139].mxu1  ;;  %v3739_v37 = vld [vmem:[%s5972_s16 + $0xe8] sm:$0xff] }
 0x41e   : > { %v3698_v24 = vadd.f32 %v5977_v52, %v3659_v57  ;;  %v3660_v22 = vmul.f32 %v5967_v13, %v3588_v6 }
 0x41f   : > { %v3764_v15 = vadd.f32 %v3732_v19, %v3700_v20  ;;  %v3701_v47 = vadd.f32 %v5977_v52, %v3662_v27 }
 0x420   : > { %v3762_v16 = vadd.f32 %v3730_v50, %v3698_v24  ;;  %v3699_v55 = vadd.f32 %v5977_v52, %v3660_v22 }
 0x421   : > { %v3796_v25 = vmax.f32 %v3764_v15, 0.0  ;;  %v3765_v61 = vadd.f32 %v3733_v5, %v3701_v47 }
 0x422   : > { %v3794_v8 = vmax.f32 %v3762_v16, 0.0  ;;  %v3763_v51 = vadd.f32 %v3731_v53, %v3699_v55 }
 0x423   : > { %3828 = vst.msk [vmem:[%s5993_s24 + $0xb0] sm:$0xff] %vm711_vm0, %v3796_v25  ;;  %v3797_v35 = vmax.f32 %v3765_v61, 0.0 }
 0x424   : > { %3826 = vst.msk [vmem:[%s5993_s24 + $0xa0] sm:$0xff] %vm711_vm0, %v3794_v8  ;;  %v3795_v26 = vmax.f32 %v3763_v51, 0.0 }
 0x425   : > { %3829 = vst.msk [vmem:[%s5993_s24 + $0xb8] sm:$0xff] %vm711_vm0, %v3797_v35 }
 0x426   : > { %3827 = vst.msk [vmem:[%s5993_s24 + $0xa8] sm:$0xff] %vm711_vm0, %v3795_v26 }
 0x42a   : > { %v4604_v62 = vpop.f32.mrb[140].mxu1 }
 0x42b   : > { %v3665_v49 = vmul.f32 %v4604_v62, %v5967_v13  ;;  %v3601_v7 = vpop.f32.mrb[141].mxu1 }
 0x42c   : > { %v3663_v11 = vmul.f32 %v5967_v13, %v3601_v7  ;;  %v4605_v17 = vpop.f32.mrb[142].mxu1 }
 0x42d   : > { %v3704_v23 = vadd.f32 %v5977_v52, %v3665_v49  ;;  %v3666_v32 = vmul.f32 %v4605_v17, %v5967_v13  ;;  %v3604_v18 = vpop.f32.mrb[143].mxu1 }
 0x42e   : > { %v3702_v14 = vadd.f32 %v5977_v52, %v3663_v11  ;;  %v3664_v56 = vmul.f32 %v5967_v13, %v3604_v18 }
 0x42f   : > { %v3768_v29 = vadd.f32 %v3736_v38, %v3704_v23  ;;  %v3705_v43 = vadd.f32 %v5977_v52, %v3666_v32 }
 0x430   : > { %v3766_v2 = vadd.f32 %v3734_v60, %v3702_v14  ;;  %v3703_v33 = vadd.f32 %v5977_v52, %v3664_v56 }
 0x431   : > { %v3800_v4 = vmax.f32 %v3768_v29, 0.0  ;;  %v3769_v39 = vadd.f32 %v3737_v58, %v3705_v43 }
 0x432   : > { %v3798_v36 = vmax.f32 %v3766_v2, 0.0  ;;  %v3767_v54 = vadd.f32 %v3735_v1, %v3703_v33 }
 0x433   : > { %3832 = vst.msk [vmem:[%s5993_s24 + $0xd0] sm:$0xff] %vm711_vm0, %v3800_v4  ;;  %v3801_v46 = vmax.f32 %v3769_v39, 0.0 }
 0x434   : > { %3830 = vst.msk [vmem:[%s5993_s24 + $0xc0] sm:$0xff] %vm711_vm0, %v3798_v36  ;;  %v3799_v3 = vmax.f32 %v3767_v54, 0.0 }
 0x435   : > { %3833 = vst.msk [vmem:[%s5993_s24 + $0xd8] sm:$0xff] %vm711_vm0, %v3801_v46 }
 0x436   : > { %3831 = vst.msk [vmem:[%s5993_s24 + $0xc8] sm:$0xff] %vm711_vm0, %v3799_v3 }
 0x43a   : > { %v4608_v63 = vpop.f32.mrb[144].mxu1 }
 0x43b   : > { %v3669_v40 = vmul.f32 %v4608_v63, %v5967_v13  ;;  %v3617_v0 = vpop.f32.mrb[145].mxu1 }
 0x43c   : > { %v3667_v9 = vmul.f32 %v5967_v13, %v3617_v0  ;;  %v4609_v34 = vpop.f32.mrb[146].mxu1 }
 0x43d   : > { %v3708_v59 = vadd.f32 %v5977_v52, %v3669_v40  ;;  %v3670_v41 = vmul.f32 %v4609_v34, %v5967_v13  ;;  %v3620_v28 = vpop.f32.mrb[147].mxu1 }
 0x43e   : > { %v3706_v10 = vadd.f32 %v5977_v52, %v3667_v9  ;;  %v3668_v31 = vmul.f32 %v5967_v13, %v3620_v28 }
 0x43f   : > { %v3772_v21 = vadd.f32 %v3740_v48, %v3708_v59  ;;  %v3709_v42 = vadd.f32 %v5977_v52, %v3670_v41 }
 0x440   : > { %v3770_v44 = vadd.f32 %v3738_v30, %v3706_v10  ;;  %v3707_v19 = vadd.f32 %v5977_v52, %v3668_v31 }
 0x441   : > { %v3804_v57 = vmax.f32 %v3772_v21, 0.0  ;;  %v3773_v12 = vadd.f32 %v3741_v45, %v3709_v42 }
 0x442   : > { %v3802_v20 = vmax.f32 %v3770_v44, 0.0  ;;  %v3771_v50 = vadd.f32 %v3739_v37, %v3707_v19 }
 0x443   : > { %3836 = vst.msk [vmem:[%s5993_s24 + $0xf0] sm:$0xff] %vm711_vm0, %v3804_v57  ;;  %v3805_v27 = vmax.f32 %v3773_v12, 0.0 }
 0x444   : > { %3834 = vst.msk [vmem:[%s5993_s24 + $0xe0] sm:$0xff] %vm711_vm0, %v3802_v20  ;;  %v3803_v6 = vmax.f32 %v3771_v50, 0.0 }
 0x445   : > { %3837 = vst.msk [vmem:[%s5993_s24 + $0xf8] sm:$0xff] %vm711_vm0, %v3805_v27 }
 0x446   : > { %3835 = vst.msk [vmem:[%s5993_s24 + $0xe8] sm:$0xff] %vm711_vm0, %v3803_v6 }
 0x447 PF: > { %s21_s19 = sadd.s32 1, %s4708_s19   ;;  %s6165_s17 = smov %s4704_s18 }
 0x448   : > { %p18_p5 = scmp.ge.s32.totalorder %s21_s19, 4   ;;  %s6166_s18 = smov %s6168_s20 }
 0x44a   :  { %20 = sbr.rel (!%p18_p5) target bundleno = 2 (0x2), region = 102 }

</bundles_post_ra>
